<compile_context>
chip_gen: v6e
topology: v6e:2x2x1
jax: 0.10.0
libtpu: 0.0.40
codegen_flags: <defaults>
</compile_context>

<pallas_src>
import jax
import jax.numpy as jnp
from jax import lax
from jax.experimental import pallas as pl
from jax.experimental.pallas import tpu as pltpu


def discriminator_kernel(x_ref, w1_ref, b1_ref, w2_ref, b2_ref, w3t_ref, b3_ref, o_ref):
    """Whole forward pass for one batch tile, entirely in VMEM."""
    x = x_ref[...]                                                   # (TB, D) bf16

    # Layer 1: Linear(D, 512) + LeakyReLU(0.2)   (f32 accumulation)
    h = jnp.dot(x, w1_ref[...], preferred_element_type=jnp.float32) + b1_ref[...]
    h = jnp.maximum(h, 0.2 * h)                                      # leaky relu (mul + max)
    h = h.astype(jnp.bfloat16)

    # Layer 2: Linear(512, 256) + LeakyReLU(0.2)
    h = jnp.dot(h, w2_ref[...], preferred_element_type=jnp.float32) + b2_ref[...]
    h = jnp.maximum(h, 0.2 * h)
    h = h.astype(jnp.bfloat16)                                       # (TB, 256)

    # Layer 3: only the single real output column.  Contract the feature dim of
    # the (1, 256) weight row with the feature dim of h (NT matmul, same
    # contraction pattern as q @ k^T) -> (1, TB): batch ends up on lanes, so the
    # output tile is lane-dense.
    z = lax.dot_general(
        w3t_ref[...], h,
        dimension_numbers=(((1,), (1,)), ((), ())),
        preferred_element_type=jnp.float32,                          # (1, TB)
    )
    z = z + b3_ref[...]                                              # (1,1) broadcast

    # Sigmoid: exp on the EUP, approximate reciprocal on the EUP (no VALU divide).
    e = jnp.exp(-z)
    o_ref[...] = pl.reciprocal(1.0 + e, approx=True).astype(o_ref.dtype)


def discriminator_forward(x, params, *, batch_tile=512):
    """x: (B, img_dim) float32.  params: dict of (in,out) weights + (1,out) biases.

    Returns (B, 1) sigmoid scores, same math as the PyTorch module (bf16 matmul
    operands, f32 accumulation).
    """
    B, D = x.shape

    if B <= batch_tile:
        # One block covering the whole (possibly ragged) batch: block dims equal
        # the full array dims, so no (8, 128) divisibility issue.
        batch_tile = B
    else:
        # Multiple-of-128 tiles keep the lane-dense output block unmasked and the
        # x block sublane-aligned; edge (partial) blocks are handled by Pallas.
        assert batch_tile % 128 == 0, "batch_tile must be a multiple of 128"
    grid = pl.cdiv(B, batch_tile)

    # bf16 matmul operands (halve DMA bytes, faster MXU); biases stay f32.
    xb = x.astype(jnp.bfloat16)
    w1 = params["w1"].astype(jnp.bfloat16)
    w2 = params["w2"].astype(jnp.bfloat16)
    w3t = params["w3"].reshape(1, -1).astype(jnp.bfloat16)   # (1, 256) weight row
    b1 = params["b1"].astype(jnp.float32)
    b2 = params["b2"].astype(jnp.float32)
    b3 = params["b3"].reshape(1, 1).astype(jnp.float32)

    # Weights/biases are resident across the whole grid (constant block index).
    full = lambda arr: pl.BlockSpec(arr.shape, lambda i: (0, 0))

    out = pl.pallas_call(
        discriminator_kernel,
        out_shape=jax.ShapeDtypeStruct((1, B), jnp.float32),
        grid_spec=pltpu.PrefetchScalarGridSpec(
            num_scalar_prefetch=0,
            grid=(grid,),
            in_specs=[
                pl.BlockSpec((batch_tile, D), lambda i: (i, 0)),   # x tile
                full(w1), full(b1),
                full(w2), full(b2),
                full(w3t), full(b3),
            ],
            # Lane-dense output: batch on lanes, one row.
            out_specs=pl.BlockSpec((1, batch_tile), lambda i: (0, i)),
        ),
        compiler_params=pltpu.CompilerParams(
            dimension_semantics=("parallel",),   # batch tiles shard across TCs (v7x)
        ),
    )(xb, w1, b1, w2, b2, w3t, b3)

    return out.reshape(B, 1)


def init_params(key, img_dim):
    """Deterministic init mimicking nn.Linear default (uniform +- 1/sqrt(fan_in))."""
    def linear(key, fan_in, fan_out):
        kw, kb = jax.random.split(key)
        bound = 1.0 / jnp.sqrt(fan_in)
        w = jax.random.uniform(kw, (fan_in, fan_out), jnp.float32, -bound, bound)
        b = jax.random.uniform(kb, (1, fan_out), jnp.float32, -bound, bound)
        return w, b

    k1, k2, k3 = jax.random.split(key, 3)
    w1, b1 = linear(k1, img_dim, 512)
    w2, b2 = linear(k2, 512, 256)
    w3, b3 = linear(k3, 256, 1)
    return {"w1": w1, "b1": b1, "w2": w2, "b2": b2, "w3": w3, "b3": b3}


def reference_forward(x, p):
    """Pure-JAX f32 reference matching the PyTorch module."""
    h = x @ p["w1"] + p["b1"]
    h = jnp.where(h > 0, h, 0.2 * h)
    h = h @ p["w2"] + p["b2"]
    h = jnp.where(h > 0, h, 0.2 * h)
    z = h @ p["w3"] + p["b3"]
    return jax.nn.sigmoid(z)


if __name__ == "__main__":
    key = jax.random.PRNGKey(0)
    kx1, kx2, kp = jax.random.split(key, 3)

    IMG_DIM = 784  # flattened 28x28 image, as the GAN discriminator implies
    params = init_params(kp, IMG_DIM)

    # Tolerance accounts for bf16 matmul operands + approximate EUP reciprocal
    # versus the f32 reference (outputs are sigmoid scores in [0, 1]).
    TOL = 3e-2

    # Case 1: small batch, single block (block dims == full array dims).
    B1 = 64
    x1 = jax.random.normal(kx1, (B1, IMG_DIM), jnp.float32)
    out1 = jax.block_until_ready(discriminator_forward(x1, params))
    ref1 = reference_forward(x1, params)
    assert out1.shape == (B1, 1)
    assert float(jnp.max(jnp.abs(out1 - ref1))) < TOL

    # Case 2: two full 512-row tiles -> exercises the 1-D grid and the 'parallel'
    # batch axis (both TensorCores get work on v7x).
    B2 = 1024
    x2 = jax.random.normal(kx2, (B2, IMG_DIM), jnp.float32)
    out2 = jax.block_until_ready(discriminator_forward(x2, params))
    ref2 = reference_forward(x2, params)
    assert out2.shape == (B2, 1)
    assert float(jnp.max(jnp.abs(out2 - ref2))) < TOL

    print("KERNEL_OK")
</pallas_src>

<mosaic_0001>
module attributes {stable_mosaic.version = 11 : i64} {
  func.func @discriminator_kernel(%arg0: i32, %arg1: memref<64x784xbf16, #tpu.memory_space<vmem>>, %arg2: memref<784x512xbf16, #tpu.memory_space<vmem>>, %arg3: memref<1x512xf32, #tpu.memory_space<vmem>>, %arg4: memref<512x256xbf16, #tpu.memory_space<vmem>>, %arg5: memref<1x256xf32, #tpu.memory_space<vmem>>, %arg6: memref<1x256xbf16, #tpu.memory_space<vmem>>, %arg7: memref<1x1xf32, #tpu.memory_space<vmem>>, %arg8: memref<1x64xf32, #tpu.memory_space<vmem>>) attributes {dimension_semantics = [#tpu.dimension_semantics<parallel>], iteration_bounds = array<i64: 1>, scalar_prefetch = 0 : i64, scratch_operands = 0 : i64, tpu.core_type = #tpu.core_type<tc>, window_params = [{transform_indices = @transform_0, window_bounds = array<i64: 64, 784>}, {pipeline_mode = #tpu.pipeline_mode<synchronous>, transform_indices = @transform_1, window_bounds = array<i64: 784, 512>}, {pipeline_mode = #tpu.pipeline_mode<synchronous>, transform_indices = @transform_2, window_bounds = array<i64: 1, 512>}, {pipeline_mode = #tpu.pipeline_mode<synchronous>, transform_indices = @transform_3, window_bounds = array<i64: 512, 256>}, {pipeline_mode = #tpu.pipeline_mode<synchronous>, transform_indices = @transform_4, window_bounds = array<i64: 1, 256>}, {pipeline_mode = #tpu.pipeline_mode<synchronous>, transform_indices = @transform_5, window_bounds = array<i64: 1, 256>}, {pipeline_mode = #tpu.pipeline_mode<synchronous>, transform_indices = @transform_6, window_bounds = array<i64: 1, 1>}, {transform_indices = @transform_7, window_bounds = array<i64: 1, 64>}]} {
    %c0 = arith.constant 0 : index
    %c0_0 = arith.constant 0 : index
    %0 = vector.load %arg1[%c0, %c0_0] : memref<64x784xbf16, #tpu.memory_space<vmem>>, vector<64x784xbf16>
    %c0_1 = arith.constant 0 : index
    %c0_2 = arith.constant 0 : index
    %1 = vector.load %arg2[%c0_1, %c0_2] : memref<784x512xbf16, #tpu.memory_space<vmem>>, vector<784x512xbf16>
    %cst = arith.constant dense<0.000000e+00> : vector<64x512xf32>
    %2 = tpu.matmul %0, %1, %cst {dimension_numbers = #tpu.dot_dimension_numbers<[1], [0], [0], [1], [0, 0, 1, 1], [], []>} : vector<64x784xbf16>, vector<784x512xbf16>, vector<64x512xf32> -> vector<64x512xf32>
    %c0_3 = arith.constant 0 : index
    %c0_4 = arith.constant 0 : index
    %3 = vector.load %arg3[%c0_3, %c0_4] : memref<1x512xf32, #tpu.memory_space<vmem>>, vector<1x512xf32>
    %4 = vector.broadcast %3 : vector<1x512xf32> to vector<64x512xf32>
    %5 = arith.addf %2, %4 : vector<64x512xf32>
    %cst_5 = arith.constant 2.000000e-01 : f32
    %6 = vector.broadcast %cst_5 : f32 to vector<64x512xf32>
    %7 = arith.mulf %6, %5 : vector<64x512xf32>
    %8 = arith.maximumf %5, %7 : vector<64x512xf32>
    %9 = arith.truncf %8 : vector<64x512xf32> to vector<64x512xbf16>
    %c0_6 = arith.constant 0 : index
    %c0_7 = arith.constant 0 : index
    %10 = vector.load %arg4[%c0_6, %c0_7] : memref<512x256xbf16, #tpu.memory_space<vmem>>, vector<512x256xbf16>
    %cst_8 = arith.constant dense<0.000000e+00> : vector<64x256xf32>
    %11 = tpu.matmul %9, %10, %cst_8 {dimension_numbers = #tpu.dot_dimension_numbers<[1], [0], [0], [1], [0, 0, 1, 1], [], []>} : vector<64x512xbf16>, vector<512x256xbf16>, vector<64x256xf32> -> vector<64x256xf32>
    %c0_9 = arith.constant 0 : index
    %c0_10 = arith.constant 0 : index
    %12 = vector.load %arg5[%c0_9, %c0_10] : memref<1x256xf32, #tpu.memory_space<vmem>>, vector<1x256xf32>
    %13 = vector.broadcast %12 : vector<1x256xf32> to vector<64x256xf32>
    %14 = arith.addf %11, %13 : vector<64x256xf32>
    %cst_11 = arith.constant 2.000000e-01 : f32
    %15 = vector.broadcast %cst_11 : f32 to vector<64x256xf32>
    %16 = arith.mulf %15, %14 : vector<64x256xf32>
    %17 = arith.maximumf %14, %16 : vector<64x256xf32>
    %18 = arith.truncf %17 : vector<64x256xf32> to vector<64x256xbf16>
    %c0_12 = arith.constant 0 : index
    %c0_13 = arith.constant 0 : index
    %19 = vector.load %arg6[%c0_12, %c0_13] : memref<1x256xbf16, #tpu.memory_space<vmem>>, vector<1x256xbf16>
    %cst_14 = arith.constant dense<0.000000e+00> : vector<1x64xf32>
    %20 = tpu.matmul %19, %18, %cst_14 {dimension_numbers = #tpu.dot_dimension_numbers<[1], [1], [0], [0], [0, 0, 1, 0], [], []>} : vector<1x256xbf16>, vector<64x256xbf16>, vector<1x64xf32> -> vector<1x64xf32>
    %c0_15 = arith.constant 0 : index
    %c0_16 = arith.constant 0 : index
    %21 = vector.load %arg7[%c0_15, %c0_16] : memref<1x1xf32, #tpu.memory_space<vmem>>, vector<1x1xf32>
    %22 = vector.broadcast %21 : vector<1x1xf32> to vector<1x64xf32>
    %23 = arith.addf %20, %22 : vector<1x64xf32>
    %cst_17 = arith.constant 0.000000e+00 : f32
    %24 = vector.broadcast %cst_17 : f32 to vector<1x64xf32>
    %25 = arith.subf %24, %23 : vector<1x64xf32>
    %26 = math.exp %25 : vector<1x64xf32>
    %cst_18 = arith.constant 1.000000e+00 : f32
    %27 = vector.broadcast %cst_18 : f32 to vector<1x64xf32>
    %28 = arith.addf %27, %26 : vector<1x64xf32>
    %29 = tpu.reciprocal %28 {approx = true} : vector<1x64xf32> -> vector<1x64xf32>
    %c0_19 = arith.constant 0 : index
    %c0_20 = arith.constant 0 : index
    %30 = vector.load %arg8[%c0_19, %c0_20] : memref<1x64xf32, #tpu.memory_space<vmem>>, vector<1x64xf32>
    tpu.vector_store %arg8[%c0_19, %c0_20], %29 {strides = array<i32>} : memref<1x64xf32, #tpu.memory_space<vmem>>, vector<1x64xf32>,
    return
  }
  func.func @transform_0(%arg0: i32) -> (i32, i32) {
    %c0_i32 = arith.constant 0 : i32
    %c0_i32_0 = arith.constant 0 : i32
    return %arg0, %c0_i32 : i32, i32
  }
  func.func @transform_1(%arg0: i32) -> (i32, i32) {
    %c0_i32 = arith.constant 0 : i32
    %c0_i32_0 = arith.constant 0 : i32
    %c0_i32_1 = arith.constant 0 : i32
    return %c0_i32, %c0_i32_0 : i32, i32
  }
  func.func @transform_2(%arg0: i32) -> (i32, i32) {
    %c0_i32 = arith.constant 0 : i32
    %c0_i32_0 = arith.constant 0 : i32
    %c0_i32_1 = arith.constant 0 : i32
    return %c0_i32, %c0_i32_0 : i32, i32
  }
  func.func @transform_3(%arg0: i32) -> (i32, i32) {
    %c0_i32 = arith.constant 0 : i32
    %c0_i32_0 = arith.constant 0 : i32
    %c0_i32_1 = arith.constant 0 : i32
    return %c0_i32, %c0_i32_0 : i32, i32
  }
  func.func @transform_4(%arg0: i32) -> (i32, i32) {
    %c0_i32 = arith.constant 0 : i32
    %c0_i32_0 = arith.constant 0 : i32
    %c0_i32_1 = arith.constant 0 : i32
    return %c0_i32, %c0_i32_0 : i32, i32
  }
  func.func @transform_5(%arg0: i32) -> (i32, i32) {
    %c0_i32 = arith.constant 0 : i32
    %c0_i32_0 = arith.constant 0 : i32
    %c0_i32_1 = arith.constant 0 : i32
    return %c0_i32, %c0_i32_0 : i32, i32
  }
  func.func @transform_6(%arg0: i32) -> (i32, i32) {
    %c0_i32 = arith.constant 0 : i32
    %c0_i32_0 = arith.constant 0 : i32
    %c0_i32_1 = arith.constant 0 : i32
    return %c0_i32, %c0_i32_0 : i32, i32
  }
  func.func @transform_7(%arg0: i32) -> (i32, i32) {
    %c0_i32 = arith.constant 0 : i32
    %c0_i32_0 = arith.constant 0 : i32
    return %c0_i32, %arg0 : i32, i32
  }
}

</mosaic_0001>

<bundles_post_ra>
// kernel: tpu_custom_call.1
= control target key start
LH: loop header
LB: loop body
LE: loop exit
PB: predicated region body
PF: predicated region fallthrough
CT: control target
= control target key end

     0   :  { %s4104_s0 = inlined_call_operand.hbm [shape: bf16[64,784], index: 0, kind: input, shape index: {}]   ;;  %s4105_s1 = inlined_call_operand.hbm [shape: bf16[784,512], index: 1, kind: input, shape index: {}]   ;;  %s4106_s2 = inlined_call_operand.vmem [shape: f32[1,512], index: 2, kind: input, shape index: {}]   ;;  %s4107_s3 = inlined_call_operand.hbm [shape: bf16[512,256], index: 3, kind: input, shape index: {}]   ;;  %s4108_s4 = inlined_call_operand.vmem [shape: f32[1,256], index: 4, kind: input, shape index: {}]   ;;  %s4109_s5 = inlined_call_operand.vmem [shape: bf16[1,256], index: 5, kind: input, shape index: {}]   ;;  %s4110_s6 = inlined_call_operand.<no memory space> [shape: f32[1,1], index: 6, kind: input, shape index: {}]   ;;  %s4111_s7 = inlined_call_operand.hbm [shape: f32[1,64], index: 7, kind: output, shape index: {}]  }
   0x1   :  { %v12_v0 = vstv %s4110_s6 }
   0x2   :  { %13 = vst [vmem:[#allocation2] sm:$0x1] %v12_v0 }
   0x3   :  { %14 = vsyncpa [#allocation4], 0 }
   0x4   :  { %15 = vsyncpa [#allocation7], 0 }
   0x5   :  { %16 = vsyncpa [#allocation5], 0  ;;  %s3629_s26 = smov [#allocation6]  }
   0x6   :  { %s34_s27 = sshll.u32 %s3629_s26, 4  ;;  %s35_s27 = int_to_ptr.vmem [resolvable:$true] %s34_s27 }
   0x7   :  { %s3551_s28 = scalar_lea.vmem %s35_s27, 25088  ;;  %p3556_p1 = scmp.lt.s32.totalorder %s35_s27, %s35_s27 }
   0x8   :  { %p3552_p0 = scmp.ne.s32.totalorder %s35_s27, %s3551_s28  ;;  %p3557_p2 = scmp.lt.s32.totalorder %s3551_s28, %s3551_s28 }
   0xa   :  { %p3558_p3 = por %p3557_p2, %p3556_p1 }
   0xc   :  { %p3559_p4 = pnand %p3558_p3, %p3552_p0 }
   0xe   :  { %3562 = shalt.err (!%p3559_p4)
}
   0xf   :  { %s3630_s29 = smov 256   ;;  %s3631_s30 = smov 16  }
  0x10   :  { %40 = dma.hbm_to_vmem [thread:$0]  %s4105_s1, 25088, %s35_s27, [#allocation7], %s3630_s29, %s3630_s29, %s3631_s30  }
  0x11   :  { %s3632_s6 = smov [#allocation3]  }
  0x12   :  { %s22_s10 = sshll.u32 %s3632_s6, 4  ;;  %s23_s10 = int_to_ptr.vmem [resolvable:$true] %s22_s10 }
  0x13   :  { %s3571_s11 = scalar_lea.vmem %s23_s10, 3584  ;;  %p3576_p6 = scmp.lt.s32.totalorder %s23_s10, %s23_s10 }
  0x14   :  { %p3572_p5 = scmp.ne.s32.totalorder %s23_s10, %s3571_s11  ;;  %p3577_p7 = scmp.lt.s32.totalorder %s3571_s11, %s3571_s11 }
  0x16   :  { %p3578_p8 = por %p3577_p7, %p3576_p6 }
  0x18   :  { %p3579_p9 = pnand %p3578_p8, %p3572_p5 }
  0x1a   :  { %3582 = shalt.err (!%p3579_p9)
}
  0x1b   :  { %s3633_s12 = smov 448   ;;  %s3634_s13 = smov 28  }
  0x1c   :  { %28 = dma.hbm_to_vmem [thread:$0]  %s4104_s0, 3584, %s23_s10, [#allocation4], %s3633_s12, %s3633_s12, %s3634_s13  }
  0x1d   :  { %s3635_s16 = smov [#allocation8]  }
  0x1e   :  { %s48_s17 = sshll.u32 %s3635_s16, 4  ;;  %s49_s17 = int_to_ptr.vmem [resolvable:$true] %s48_s17 }
  0x1f   :  { %s3591_s1 = scalar_lea.vmem %s49_s17, 8192  ;;  %p3596_p11 = scmp.lt.s32.totalorder %s49_s17, %s49_s17 }
  0x20   :  { %p3592_p10 = scmp.ne.s32.totalorder %s49_s17, %s3591_s1  ;;  %p3597_p12 = scmp.lt.s32.totalorder %s3591_s1, %s3591_s1 }
  0x22   :  { %p3598_p13 = por %p3597_p12, %p3596_p11 }
  0x24   :  { %p3599_p0 = pnand %p3598_p13, %p3592_p10 }
  0x26   :  { %3602 = shalt.err (!%p3599_p0)
}
  0x27   :  { %s3636_s18 = smov 128   ;;  %s3637_s19 = smov 8  }
  0x28   :  { %54 = dma.hbm_to_vmem [thread:$0]  %s4107_s3, 8192, %s49_s17, [#allocation7], %s3636_s18, %s3636_s18, %s3637_s19  }
  0x29   :  { %3623 = dma.done.wait [#allocation4], 3584  }
  0x2a   :  { %3624 = vsyncadd [#allocation4], 4294963712 }
  0x2b   :  { %3625 = dma.done.wait [#allocation7], 33280  }
  0x2c   :  { %3626 = vsyncadd [#allocation7], 4294934016  ;;  %v3638_v1 = vmov 0   ;;  %v3109_v2 = vld [vmem:[#allocation6 + $0xe4] ss:$16 sps:$4 sm:$0xff]   ;;  %vm1441_vm0 = vcmask 130048  }
  0x2d   :  { %3108 = vset.pattern.permute.xlu0 %v3638_v1  ;;  %v3111_v3 = vld [vmem:[#allocation6 + $0x2e4] ss:$16 sps:$4 sm:$0xff]   ;;  %1454 = vmatprep.subr.bf16.mxu0 %v3109_v2  ;;  %v3113_v4 = vld [vmem:[#allocation6 + $0xe0] ss:$16 sps:$4 sm:$0xff]   ;;  %v3696_v53 = vld [vmem:[#allocation3 + $0xc] ss:$28 sps:$4 sm:$0xff]  }
  0x2e   :  { %v3114_v5 = vld [vmem:[#allocation6 + $0x2e0] ss:$16 sps:$4 sm:$0xff]   ;;  %1527 = vmatprep.subr.bf16.mxu1 %v3111_v3  ;;  %v3115_v6 = vld [vmem:[#allocation6 + $0xc4] ss:$16 sps:$4 sm:$0xff]   ;;  %1455 = vmatpush1.bf16.msra.mxu0 %v3113_v4  ;;  %vm2781_vm1 = vcmask 516096  }
  0x2f   :  { %1528 = vmatpush1.bf16.msra.mxu1 %v3114_v5  ;;  %v3117_v7 = vld [vmem:[#allocation6 + $0x2c4] ss:$16 sps:$4 sm:$0xff]   ;;  %v3119_v8 = vld [vmem:[#allocation6 + $0xc0] ss:$16 sps:$4 sm:$0xff]   ;;  %1456 = vmatprep.subr.bf16.mxu0 %v3115_v6 }
  0x30   :  { %v3120_v9 = vld [vmem:[#allocation6 + $0x2c0] ss:$16 sps:$4 sm:$0xff]   ;;  %1529 = vmatprep.subr.bf16.mxu1 %v3117_v7  ;;  %v3121_v10 = vld [vmem:[#allocation6 + $0xa4] ss:$16 sps:$4 sm:$0xff]   ;;  %1559 = vmatprep.mubr.bf16.mxu1 %v3696_v53 }
  0x31   :  { %v3123_v11 = vld [vmem:[#allocation6 + $0x2a4] ss:$16 sps:$4 sm:$0xff]   ;;  %v3125_v12 = vld [vmem:[#allocation6 + $0xa0] ss:$16 sps:$4 sm:$0xff]  }
  0x32   :  { %v3126_v13 = vld [vmem:[#allocation6 + $0x2a0] ss:$16 sps:$4 sm:$0xff]   ;;  %1457 = vmatpush1.bf16.msra.mxu0 %v3119_v8  ;;  %v3127_v14 = vld [vmem:[#allocation6 + $0x84] ss:$16 sps:$4 sm:$0xff]  }
  0x33   :  { %1530 = vmatpush1.bf16.msra.mxu1 %v3120_v9  ;;  %1458 = vmatprep.subr.bf16.mxu0 %v3121_v10  ;;  %v3129_v15 = vld [vmem:[#allocation6 + $0x284] ss:$16 sps:$4 sm:$0xff]   ;;  %v3131_v16 = vld [vmem:[#allocation6 + $0x80] ss:$16 sps:$4 sm:$0xff]  }
  0x34   :  { %1531 = vmatprep.subr.bf16.mxu1 %v3123_v11  ;;  %v3132_v17 = vld [vmem:[#allocation6 + $0x280] ss:$16 sps:$4 sm:$0xff]   ;;  %v3133_v18 = vld [vmem:[#allocation6 + $0x64] ss:$16 sps:$4 sm:$0xff]  }
  0x35   :  { %v3135_v19 = vld [vmem:[#allocation6 + $0x264] ss:$16 sps:$4 sm:$0xff]   ;;  %v3137_v20 = vld [vmem:[#allocation6 + $0x60] ss:$16 sps:$4 sm:$0xff]  }
  0x36   :  { %1459 = vmatpush1.bf16.msra.mxu0 %v3125_v12  ;;  %v3138_v21 = vld [vmem:[#allocation6 + $0x260] ss:$16 sps:$4 sm:$0xff]   ;;  %v3139_v22 = vld [vmem:[#allocation6 + $0x44] ss:$16 sps:$4 sm:$0xff]   ;;  %v3704_v12 = vld [vmem:[#allocation3 + $0x3c] ss:$28 sps:$4 sm:$0xff]  }
  0x37   :  { %1532 = vmatpush1.bf16.msra.mxu1 %v3126_v13  ;;  %1460 = vmatprep.subr.bf16.mxu0 %v3127_v14  ;;  %v3141_v23 = vld [vmem:[#allocation6 + $0x244] ss:$16 sps:$4 sm:$0xff]   ;;  %v3143_v24 = vld [vmem:[#allocation6 + $0x40] ss:$16 sps:$4 sm:$0xff]   ;;  %v3258_v14 = vld [vmem:[#allocation6 + $0xec] ss:$16 sps:$4 sm:$0xff]  }
  0x38   :  { %1533 = vmatprep.subr.bf16.mxu1 %v3129_v15  ;;  %v3144_v25 = vld [vmem:[#allocation6 + $0x240] ss:$16 sps:$4 sm:$0xff]   ;;  %v3145_v26 = vld [vmem:[#allocation6 + $0x24] ss:$16 sps:$4 sm:$0xff]  }
  0x39   :  { %v3147_v27 = vld [vmem:[#allocation6 + $0x224] ss:$16 sps:$4 sm:$0xff]   ;;  %v3149_v28 = vld [vmem:[#allocation6 + $0x20] ss:$16 sps:$4 sm:$0xff]  }
  0x3a   :  { %1461 = vmatpush1.bf16.msra.mxu0 %v3131_v16  ;;  %v3150_v29 = vld [vmem:[#allocation6 + $0x220] ss:$16 sps:$4 sm:$0xff]   ;;  %v3151_v30 = vld [vmem:[#allocation6 + $0x4] ss:$16 sps:$4 sm:$0xff]  }
  0x3b   :  { %1534 = vmatpush1.bf16.msra.mxu1 %v3132_v17  ;;  %1462 = vmatprep.subr.bf16.mxu0 %v3133_v18  ;;  %v3153_v31 = vld [vmem:[#allocation6 + $0x204] ss:$16 sps:$4 sm:$0xff]   ;;  %v3155_v32 = vld [vmem:[#allocation6] ss:$16 sps:$4 sm:$0xff]  }
  0x3c   :  { %1535 = vmatprep.subr.bf16.mxu1 %v3135_v19  ;;  %v3156_v33 = vld [vmem:[#allocation6 + $0x200] ss:$16 sps:$4 sm:$0xff]   ;;  %v3157_v34 = vld [vmem:[#allocation6 + $0x1e4] ss:$16 sps:$4 sm:$0xff]  }
  0x3d   :  { %v3159_v35 = vld [vmem:[#allocation6 + $0x3e4] ss:$16 sps:$4 sm:$0xff]   ;;  %v3161_v36 = vld [vmem:[#allocation6 + $0x1e0] ss:$16 sps:$4 sm:$0xff]  }
  0x3e   :  { %1463 = vmatpush1.bf16.msra.mxu0 %v3137_v20  ;;  %v3162_v37 = vld [vmem:[#allocation6 + $0x3e0] ss:$16 sps:$4 sm:$0xff]   ;;  %v3163_v38 = vld [vmem:[#allocation6 + $0x1c4] ss:$16 sps:$4 sm:$0xff]  }
  0x3f   :  { %1536 = vmatpush1.bf16.msra.mxu1 %v3138_v21  ;;  %1464 = vmatprep.subr.bf16.mxu0 %v3139_v22  ;;  %v3165_v39 = vld [vmem:[#allocation6 + $0x3c4] ss:$16 sps:$4 sm:$0xff]   ;;  %v3167_v40 = vld [vmem:[#allocation6 + $0x1c0] ss:$16 sps:$4 sm:$0xff]   ;;  %v3718_v22 = vld [vmem:[#allocation3 + $0x7c] ss:$28 sps:$4 sm:$0xff]  }
  0x40   :  { %1537 = vmatprep.subr.bf16.mxu1 %v3141_v23  ;;  %v3168_v41 = vld [vmem:[#allocation6 + $0x3c0] ss:$16 sps:$4 sm:$0xff]   ;;  %v3169_v42 = vld [vmem:[#allocation6 + $0x1a4] ss:$16 sps:$4 sm:$0xff]  }
  0x41   :  { %v3171_v43 = vld [vmem:[#allocation6 + $0x3a4] ss:$16 sps:$4 sm:$0xff]   ;;  %v3173_v44 = vld [vmem:[#allocation6 + $0x1a0] ss:$16 sps:$4 sm:$0xff]  }
  0x42   :  { %1465 = vmatpush1.bf16.msra.mxu0 %v3143_v24  ;;  %v3174_v45 = vld [vmem:[#allocation6 + $0x3a0] ss:$16 sps:$4 sm:$0xff]   ;;  %v3175_v46 = vld [vmem:[#allocation6 + $0x184] ss:$16 sps:$4 sm:$0xff]  }
  0x43   :  { %1538 = vmatpush1.bf16.msra.mxu1 %v3144_v25  ;;  %1466 = vmatprep.subr.bf16.mxu0 %v3145_v26  ;;  %v3177_v47 = vld [vmem:[#allocation6 + $0x384] ss:$16 sps:$4 sm:$0xff]   ;;  %v3179_v48 = vld [vmem:[#allocation6 + $0x180] ss:$16 sps:$4 sm:$0xff]  }
  0x44   :  { %1539 = vmatprep.subr.bf16.mxu1 %v3147_v27  ;;  %v3180_v49 = vld [vmem:[#allocation6 + $0x380] ss:$16 sps:$4 sm:$0xff]   ;;  %v3181_v50 = vld [vmem:[#allocation6 + $0x164] ss:$16 sps:$4 sm:$0xff]  }
  0x45   :  { %v3694_v51 = vld [vmem:[#allocation3 + $0x4] ss:$28 sps:$4 sm:$0xff]   ;;  %v3712_v17 = vld [vmem:[#allocation3 + $0x38] ss:$28 sps:$4 sm:$0xff]   ;;  %v3724_v25 = vld [vmem:[#allocation3 + $0x70] ss:$28 sps:$4 sm:$0xff]  }
  0x46   :  { %1467 = vmatpush1.bf16.msra.mxu0 %v3149_v28  ;;  %v3183_v52 = vld [vmem:[#allocation6 + $0x364] ss:$16 sps:$4 sm:$0xff]   ;;  %1486 = vmatprep.mubr.bf16.mxu0 %v3694_v51  ;;  %v3185_v54 = vld [vmem:[#allocation6 + $0x160] ss:$16 sps:$4 sm:$0xff]  }
  0x47   :  { %1540 = vmatpush1.bf16.msra.mxu1 %v3150_v29  ;;  %1468 = vmatprep.subr.bf16.mxu0 %v3151_v30  ;;  %v3186_v55 = vld [vmem:[#allocation6 + $0x360] ss:$16 sps:$4 sm:$0xff]   ;;  %v3187_v56 = vld [vmem:[#allocation6 + $0x144] ss:$16 sps:$4 sm:$0xff]   ;;  %v3728_v29 = vld [vmem:[#allocation3 + $0xac] ss:$28 sps:$4 sm:$0xff]  }
  0x48   :  { %1541 = vmatprep.subr.bf16.mxu1 %v3153_v31  ;;  %v3189_v57 = vld [vmem:[#allocation6 + $0x344] ss:$16 sps:$4 sm:$0xff]   ;;  %v3191_v58 = vld [vmem:[#allocation6 + $0x140] ss:$16 sps:$4 sm:$0xff]  }
  0x49   :  { %v3192_v59 = vld [vmem:[#allocation6 + $0x340] ss:$16 sps:$4 sm:$0xff]   ;;  %v3193_v60 = vld [vmem:[#allocation6 + $0x124] ss:$16 sps:$4 sm:$0xff]  }
  0x4a   :  { %1469 = vmatpush1.bf16.msra.mxu0 %v3155_v32  ;;  %v3195_v61 = vld [vmem:[#allocation6 + $0x324] ss:$16 sps:$4 sm:$0xff]   ;;  %v3197_v62 = vld [vmem:[#allocation6 + $0x120] ss:$16 sps:$4 sm:$0xff]  }
  0x4b   :  { %1542 = vmatpush1.bf16.msra.mxu1 %v3156_v33  ;;  %1470 = vmatprep.subr.bf16.mxu0 %v3157_v34  ;;  %v3198_v63 = vld [vmem:[#allocation6 + $0x320] ss:$16 sps:$4 sm:$0xff]   ;;  %v3199_v0 = vld [vmem:[#allocation6 + $0x104] ss:$16 sps:$4 sm:$0xff]  }
  0x4c   :  { %1543 = vmatprep.subr.bf16.mxu1 %v3159_v35  ;;  %v3201_v2 = vld [vmem:[#allocation6 + $0x304] ss:$16 sps:$4 sm:$0xff]   ;;  %v3203_v3 = vld [vmem:[#allocation6 + $0x100] ss:$16 sps:$4 sm:$0xff]  }
  0x4d   :  { %v3204_v4 = vld [vmem:[#allocation6 + $0x300] ss:$16 sps:$4 sm:$0xff]   ;;  %v3213_v5 = vld [vmem:[#allocation6 + $0x4e4] ss:$16 sps:$4 sm:$0xff]  }
  0x4e   :  { %1471 = vmatpush2.bf16.msra.mxu0 %v3161_v36  ;;  %v3216_v6 = vld [vmem:[#allocation6 + $0x604] ss:$16 sps:$4 sm:$0xff]   ;;  %v3700_v7 = vld [vmem:[#allocation3] ss:$28 sps:$4 sm:$0xff]   ;;  %v3738_v34 = vld [vmem:[#allocation3 + $0xb0] ss:$28 sps:$4 sm:$0xff]  }
  0x4f   :  { %1544 = vmatpush2.bf16.msra.mxu1 %v3162_v37  ;;  %1472 = vmatprep.subr.bf16.mxu0 %v3163_v38  ;;  %v3702_v8 = vld [vmem:[#allocation3 + $0x8] ss:$28 sps:$4 sm:$0xff]   ;;  %v3211_v9 = vld [vmem:[#allocation6 + $0x4e0] ss:$16 sps:$4 sm:$0xff]   ;;  %v3726_v26 = vld [vmem:[#allocation3 + $0x78] ss:$28 sps:$4 sm:$0xff]  }
  0x50   :  { %1545 = vmatprep.subr.bf16.mxu1 %v3165_v39  ;;  %v3214_v10 = vld [vmem:[#allocation6 + $0x600] ss:$16 sps:$4 sm:$0xff]   ;;  %v3219_v11 = vld [vmem:[#allocation6 + $0x4c4] ss:$16 sps:$4 sm:$0xff]  }
  0x51   :  { %v3706_v13 = vld [vmem:[#allocation3 + $0x44] ss:$28 sps:$4 sm:$0xff]   ;;  %v3716_v21 = vld [vmem:[#allocation3 + $0x74] ss:$28 sps:$4 sm:$0xff]  }
  0x52   :  { %1473 = vmatpush2.bf16.msra.mxu0 %v3167_v40  ;;  %v3217_v15 = vld [vmem:[#allocation6 + $0x4c0] ss:$16 sps:$4 sm:$0xff]   ;;  %v3228_v16 = vld [vmem:[#allocation6 + $0x4a4] ss:$16 sps:$4 sm:$0xff]   ;;  %v3256_v40 = vld [vmem:[#allocation6 + $0xe8] ss:$16 sps:$4 sm:$0xff]  }
  0x53   :  { %1546 = vmatpush2.bf16.msra.mxu1 %v3168_v41  ;;  %1474 = vmatprep.subr.bf16.mxu0 %v3169_v42  ;;  %v3714_v18 = vld [vmem:[#allocation3 + $0x40] ss:$28 sps:$4 sm:$0xff]   ;;  %v3231_v20 = vld [vmem:[#allocation6 + $0x484] ss:$16 sps:$4 sm:$0xff]  }
  0x54   :  { %1547 = vmatprep.subr.bf16.mxu1 %v3171_v43  ;;  %v3226_v19 = vld [vmem:[#allocation6 + $0x4a0] ss:$16 sps:$4 sm:$0xff]   ;;  %v3240_v24 = vld [vmem:[#allocation6 + $0x464] ss:$16 sps:$4 sm:$0xff]   ;;  %v3265_v43 = vld [vmem:[#allocation6 + $0xcc] ss:$16 sps:$4 sm:$0xff]  }
  0x55   :  { %v3229_v23 = vld [vmem:[#allocation6 + $0x480] ss:$16 sps:$4 sm:$0xff]   ;;  %v3243_v28 = vld [vmem:[#allocation6 + $0x444] ss:$16 sps:$4 sm:$0xff]  }
  0x56   :  { %1475 = vmatpush2.bf16.msra.mxu0 %v3173_v44  ;;  %v3238_v27 = vld [vmem:[#allocation6 + $0x460] ss:$16 sps:$4 sm:$0xff]   ;;  %v3252_v32 = vld [vmem:[#allocation6 + $0x424] ss:$16 sps:$4 sm:$0xff]  }
  0x57   :  { %1548 = vmatpush2.bf16.msra.mxu1 %v3174_v45  ;;  %1476 = vmatprep.subr.bf16.mxu0 %v3175_v46  ;;  %v3730_v30 = vld [vmem:[#allocation3 + $0xb4] ss:$28 sps:$4 sm:$0xff]   ;;  %v3736_v33 = vld [vmem:[#allocation3 + $0xa8] ss:$28 sps:$4 sm:$0xff]  }
  0x58   :  { %1549 = vmatprep.subr.bf16.mxu1 %v3177_v47  ;;  %v3241_v31 = vld [vmem:[#allocation6 + $0x440] ss:$16 sps:$4 sm:$0xff]   ;;  %v3255_v36 = vld [vmem:[#allocation6 + $0x404] ss:$16 sps:$4 sm:$0xff]   ;;  %v3263_v45 = vld [vmem:[#allocation6 + $0xc8] ss:$16 sps:$4 sm:$0xff]  }
  0x59   :  { %v3250_v35 = vld [vmem:[#allocation6 + $0x420] ss:$16 sps:$4 sm:$0xff]   ;;  %v3261_v39 = vld [vmem:[#allocation6 + $0x5e4] ss:$16 sps:$4 sm:$0xff]   ;;  %v3271_v47 = vld [vmem:[#allocation6 + $0xac] ss:$16 sps:$4 sm:$0xff]  }
  0x5a   :  { %1477 = vmatpush2.bf16.msra.mxu0 %v3179_v48  ;;  %v3740_v37 = vld [vmem:[#allocation3 + $0x14] ss:$28 sps:$4 sm:$0xff]  }
  0x5b   :  { %1550 = vmatpush2.bf16.msra.mxu1 %v3180_v49  ;;  %1478 = vmatprep.subr.bf16.mxu0 %v3181_v50  ;;  %v3253_v38 = vld [vmem:[#allocation6 + $0x400] ss:$16 sps:$4 sm:$0xff]   ;;  %v3746_v41 = vld [vmem:[#allocation3 + $0x18] ss:$28 sps:$4 sm:$0xff]  }
  0x5c   :  { %1551 = vmatprep.subr.bf16.mxu1 %v3183_v52  ;;  %v3259_v42 = vld [vmem:[#allocation6 + $0x5e0] ss:$16 sps:$4 sm:$0xff]   ;;  %v3268_v44 = vld [vmem:[#allocation6 + $0x5c4] ss:$16 sps:$4 sm:$0xff]   ;;  %v3269_v49 = vld [vmem:[#allocation6 + $0xa8] ss:$16 sps:$4 sm:$0xff]  }
  0x5d   :  { %v3266_v46 = vld [vmem:[#allocation6 + $0x5c0] ss:$16 sps:$4 sm:$0xff]   ;;  %v3274_v48 = vld [vmem:[#allocation6 + $0x5a4] ss:$16 sps:$4 sm:$0xff]  }
  0x5e   :  { %1479 = vmatpush2.bf16.msra.mxu0 %v3185_v54  ;;  %v3751_v50 = vld [vmem:[#allocation3 + $0x50] ss:$28 sps:$4 sm:$0xff]  }
  0x5f   :  { %1552 = vmatpush2.bf16.msra.mxu1 %v3186_v55  ;;  %1480 = vmatprep.subr.bf16.mxu0 %v3187_v56  ;;  %v3272_v52 = vld [vmem:[#allocation6 + $0x5a0] ss:$16 sps:$4 sm:$0xff]   ;;  %v3277_v54 = vld [vmem:[#allocation6 + $0x8c] ss:$16 sps:$4 sm:$0xff]   ;;  %v3280_v55 = vld [vmem:[#allocation6 + $0x584] ss:$16 sps:$4 sm:$0xff]  }
  0x60   :  { %1553 = vmatprep.subr.bf16.mxu1 %v3189_v57  ;;  %v3275_v56 = vld [vmem:[#allocation6 + $0x88] ss:$16 sps:$4 sm:$0xff]   ;;  %v3278_v57 = vld [vmem:[#allocation6 + $0x580] ss:$16 sps:$4 sm:$0xff]  }
  0x62   :  { %1481 = vmatpush2.bf16.msra.mxu0 %v3191_v58  ;;  %v3283_v58 = vld [vmem:[#allocation6 + $0x6c] ss:$16 sps:$4 sm:$0xff]  }
  0x63   :  { %1554 = vmatpush2.bf16.msra.mxu1 %v3192_v59  ;;  %1482 = vmatprep.subr.bf16.mxu0 %v3193_v60  ;;  %v3286_v59 = vld [vmem:[#allocation6 + $0x564] ss:$16 sps:$4 sm:$0xff]   ;;  %v3281_v60 = vld [vmem:[#allocation6 + $0x68] ss:$16 sps:$4 sm:$0xff]  }
  0x64   :  { %1555 = vmatprep.subr.bf16.mxu1 %v3195_v61  ;;  %v3756_v61 = vld [vmem:[#allocation3 + $0x88] ss:$28 sps:$4 sm:$0xff]  }
  0x66   :  { %1483 = vmatpush2.bf16.msra.mxu0 %v3197_v62  ;;  %v3284_v62 = vld [vmem:[#allocation6 + $0x560] ss:$16 sps:$4 sm:$0xff]  }
  0x67   :  { %1556 = vmatpush2.bf16.msra.mxu1 %v3198_v63  ;;  %1484 = vmatprep.subr.bf16.mxu0 %v3199_v0  ;;  %v3289_v63 = vld [vmem:[#allocation6 + $0x4c] ss:$16 sps:$4 sm:$0xff]   ;;  %v3292_v0 = vld [vmem:[#allocation6 + $0x544] ss:$16 sps:$4 sm:$0xff]  }
  0x68   :  { %1557 = vmatprep.subr.bf16.mxu1 %v3201_v2  ;;  %v3287_v2 = vld [vmem:[#allocation6 + $0x48] ss:$16 sps:$4 sm:$0xff]  }
  0x6a   :  { %1485 = vmatpush2.bf16.msra.mxu0 %v3203_v3  ;;  %v3290_v3 = vld [vmem:[#allocation6 + $0x540] ss:$16 sps:$4 sm:$0xff]  }
  0x6b   :  { %1558 = vmatpush2.bf16.msra.mxu1 %v3204_v4  ;;  %1600 = vmatprep.subr.bf16.mxu0 %v3213_v5  ;;  %v3295_v4 = vld [vmem:[#allocation6 + $0x2c] ss:$16 sps:$4 sm:$0xff]   ;;  %v3298_v5 = vld [vmem:[#allocation6 + $0x524] ss:$16 sps:$4 sm:$0xff]  }
  0x6c   :  { %1687 = vmatprep.subr.bf16.mxu1 %v3216_v6  ;;  %v3293_v6 = vld [vmem:[#allocation6 + $0x28] ss:$16 sps:$4 sm:$0xff]  }
  0x6d   :  { %1487 = vmatmul.mubr.bf16.vlgmr.msra.gmra.mxu0 %v3700_v7 }
  0x6e   :  { %1560 = vmatmul.mubr.bf16.vlgmr.msra.gmra.mxu1 %v3702_v8  ;;  %1601 = vmatpush1.bf16.msra.mxu0 %v3211_v9  ;;  %v3296_v9 = vld [vmem:[#allocation6 + $0x520] ss:$16 sps:$4 sm:$0xff]  }
  0x6f   :  { %1688 = vmatpush1.bf16.msra.mxu1 %v3214_v10  ;;  %1602 = vmatprep.subr.bf16.mxu0 %v3219_v11  ;;  %v3761_v10 = vld [vmem:[#allocation3 + $0xc0] ss:$28 sps:$4 sm:$0xff]  }
  0x70   :  { %1496 = vmatprep.mubr.bf16.mxu0 %v3704_v12  ;;  %1569 = vmatprep.mubr.bf16.mxu1 %v3706_v13  ;;  %v3301_v11 = vld [vmem:[#allocation6 + $0xc] ss:$16 sps:$4 sm:$0xff]  }
  0x71   :  { %1746 = vmatprep.subr.bf16.mxu1 %v3258_v14  ;;  %v3304_v14 = vld [vmem:[#allocation6 + $0x504] ss:$16 sps:$4 sm:$0xff]  }
  0x72   :  { %1603 = vmatpush1.bf16.msra.mxu0 %v3217_v15  ;;  %v3299_v15 = vld [vmem:[#allocation6 + $0x8] ss:$16 sps:$4 sm:$0xff]  }
  0x73   :  { %1604 = vmatprep.subr.bf16.mxu0 %v3228_v16  ;;  %v3302_v16 = vld [vmem:[#allocation6 + $0x500] ss:$16 sps:$4 sm:$0xff]  }
  0x75   :  { %1497 = vmatmul.mubr.bf16.gmra.mxu0 %v3712_v17 }
  0x76   :  { %1570 = vmatmul.mubr.bf16.gmra.mxu1 %v3714_v18  ;;  %1605 = vmatpush1.bf16.msra.mxu0 %v3226_v19  ;;  %v3310_v19 = vld [vmem:[#allocation6 + $0x1ec] ss:$16 sps:$4 sm:$0xff]  }
  0x77   :  { %1506 = vmatprep.mubr.bf16.mxu0 %v3716_v21  ;;  %1606 = vmatprep.subr.bf16.mxu0 %v3231_v20  ;;  %v3313_v20 = vld [vmem:[#allocation6 + $0x2ec] ss:$16 sps:$4 sm:$0xff]  }
  0x78   :  { %1579 = vmatprep.mubr.bf16.mxu1 %v3718_v22 }
  0x7a   :  { %1607 = vmatpush1.bf16.msra.mxu0 %v3229_v23  ;;  %v3765_v23 = vld [vmem:[#allocation3 + $0x10] ss:$28 sps:$4 sm:$0xff]  }
  0x7b   :  { %1608 = vmatprep.subr.bf16.mxu0 %v3240_v24  ;;  %v3308_v24 = vld [vmem:[#allocation6 + $0x1e8] ss:$16 sps:$4 sm:$0xff]  }
  0x7d   :  { %1507 = vmatmul.mubr.bf16.gmra.mxu0 %v3724_v25 }
  0x7e   :  { %1580 = vmatmul.mubr.bf16.gmra.mxu1 %v3726_v26  ;;  %1609 = vmatpush1.bf16.msra.mxu0 %v3238_v27  ;;  %v3311_v27 = vld [vmem:[#allocation6 + $0x2e8] ss:$16 sps:$4 sm:$0xff]  }
  0x7f   :  { %1516 = vmatprep.mubr.bf16.mxu0 %v3728_v29  ;;  %1610 = vmatprep.subr.bf16.mxu0 %v3243_v28  ;;  %v3317_v28 = vld [vmem:[#allocation6 + $0x1cc] ss:$16 sps:$4 sm:$0xff]  }
  0x80   :  { %1589 = vmatprep.mubr.bf16.mxu1 %v3730_v30 }
  0x82   :  { %1611 = vmatpush1.bf16.msra.mxu0 %v3241_v31  ;;  %v3320_v31 = vld [vmem:[#allocation6 + $0x2cc] ss:$16 sps:$4 sm:$0xff]  }
  0x83   :  { %1612 = vmatprep.subr.bf16.mxu0 %v3252_v32  ;;  %v3768_v32 = vld [vmem:[#allocation3 + $0x4c] ss:$28 sps:$4 sm:$0xff]  }
  0x85   :  { %1517 = vmatmul.mubr.bf16.gmra.mxu0 %v3736_v33 }
  0x86   :  { %1590 = vmatmul.mubr.bf16.gmra.mxu1 %v3738_v34  ;;  %1613 = vmatpush1.bf16.msra.mxu0 %v3250_v35  ;;  %v3315_v35 = vld [vmem:[#allocation6 + $0x1c8] ss:$16 sps:$4 sm:$0xff]  }
  0x87   :  { %1705 = vmatprep.mubr.bf16.mxu1 %v3638_v1  ;;  %1614 = vmatprep.subr.bf16.mxu0 %v3255_v36  ;;  %v3318_v36 = vld [vmem:[#allocation6 + $0x2c8] ss:$16 sps:$4 sm:$0xff]  }
  0x88   :  { %1632 = vmatprep.mubr.bf16.mxu0 %v3740_v37 }
  0x8a   :  { %1615 = vmatpush1.bf16.msra.mxu0 %v3253_v38  ;;  %v3325_v38 = vld [vmem:[#allocation6 + $0x1ac] ss:$16 sps:$4 sm:$0xff]  }
  0x8b   :  { %1616 = vmatprep.subr.bf16.mxu0 %v3261_v39  ;;  %v3323_v39 = vld [vmem:[#allocation6 + $0x1a8] ss:$16 sps:$4 sm:$0xff]  }
  0x8e   :  { %3023 = vmatmul.mubr.msk.bf16.vlgmr.msra.gmra.mxu1 %vm1441_vm0, %v3746_v41  ;;  %1617 = vmatpush2.bf16.msra.mxu0 %v3259_v42  ;;  %v3327_v42 = vld [vmem:[#allocation6 + $0x2a8] ss:$16 sps:$4 sm:$0xff]  }
  0x8f   :  { %1747 = vmatpush1.bf16.msra.mxu1 %v3256_v40  ;;  %1618 = vmatprep.subr.bf16.mxu0 %v3268_v44  ;;  %v3772_v40 = vld [vmem:[#allocation3 + $0x48] ss:$28 sps:$4 sm:$0xff]   ;;  %v3336_v44 = vld [vmem:[#allocation6 + $0x28c] ss:$16 sps:$4 sm:$0xff]  }
  0x90   :  { %1748 = vmatprep.subr.bf16.mxu1 %v3265_v43  ;;  %1715 = vmatprep.mubr.bf16.mxu1 %v3638_v1  ;;  %v3333_v43 = vld [vmem:[#allocation6 + $0x18c] ss:$16 sps:$4 sm:$0xff]  }
  0x92   :  { %1619 = vmatpush2.bf16.msra.mxu0 %v3266_v46  ;;  %v3331_v46 = vld [vmem:[#allocation6 + $0x188] ss:$16 sps:$4 sm:$0xff]  }
  0x93   :  { %1749 = vmatpush1.bf16.msra.mxu1 %v3263_v45  ;;  %1620 = vmatprep.subr.bf16.mxu0 %v3274_v48  ;;  %v3774_v45 = vld [vmem:[#allocation3 + $0x84] ss:$28 sps:$4 sm:$0xff]   ;;  %v3341_v48 = vld [vmem:[#allocation6 + $0x16c] ss:$16 sps:$4 sm:$0xff]  }
  0x94   :  { %1750 = vmatprep.subr.bf16.mxu1 %v3271_v47  ;;  %v3334_v47 = vld [vmem:[#allocation6 + $0x288] ss:$16 sps:$4 sm:$0xff]  }
  0x96   :  { %3024 = vmatmul.mubr.msk.bf16.gmra.mxu1 %vm1441_vm0, %v3751_v50  ;;  %1621 = vmatpush2.bf16.msra.mxu0 %v3272_v52  ;;  %v3339_v52 = vld [vmem:[#allocation6 + $0x168] ss:$16 sps:$4 sm:$0xff]  }
  0x97   :  { %1751 = vmatpush1.bf16.msra.mxu1 %v3269_v49  ;;  %1622 = vmatprep.subr.bf16.mxu0 %v3280_v55  ;;  %v3345_v49 = vld [vmem:[#allocation6 + $0x26c] ss:$16 sps:$4 sm:$0xff]   ;;  %v3343_v55 = vld [vmem:[#allocation6 + $0x268] ss:$16 sps:$4 sm:$0xff]  }
  0x98   :  { %1752 = vmatprep.subr.bf16.mxu1 %v3277_v54  ;;  %1725 = vmatprep.mubr.bf16.mxu1 %v3638_v1  ;;  %v3778_v54 = vld [vmem:[#allocation3 + $0x80] ss:$28 sps:$4 sm:$0xff]  }
  0x9a   :  { %1623 = vmatpush2.bf16.msra.mxu0 %v3278_v57  ;;  %v3352_v57 = vld [vmem:[#allocation6 + $0x24c] ss:$16 sps:$4 sm:$0xff]  }
  0x9b   :  { %1753 = vmatpush1.bf16.msra.mxu1 %v3275_v56  ;;  %1624 = vmatprep.subr.bf16.mxu0 %v3286_v59  ;;  %v3349_v56 = vld [vmem:[#allocation6 + $0x14c] ss:$16 sps:$4 sm:$0xff]   ;;  %v3347_v59 = vld [vmem:[#allocation6 + $0x148] ss:$16 sps:$4 sm:$0xff]  }
  0x9c   :  { %1754 = vmatprep.subr.bf16.mxu1 %v3283_v58  ;;  %v3780_v58 = vld [vmem:[#allocation3 + $0xbc] ss:$28 sps:$4 sm:$0xff]  }
  0x9e   :  { %3025 = vmatmul.mubr.msk.bf16.gmra.mxu1 %vm1441_vm0, %v3756_v61  ;;  %1625 = vmatpush2.bf16.msra.mxu0 %v3284_v62  ;;  %v3357_v62 = vld [vmem:[#allocation6 + $0x12c] ss:$16 sps:$4 sm:$0xff]  }
  0x9f   :  { %1755 = vmatpush1.bf16.msra.mxu1 %v3281_v60  ;;  %1626 = vmatprep.subr.bf16.mxu0 %v3292_v0  ;;  %v3350_v60 = vld [vmem:[#allocation6 + $0x248] ss:$16 sps:$4 sm:$0xff]  }
  0xa0   :  { %1756 = vmatprep.subr.bf16.mxu1 %v3289_v63  ;;  %1735 = vmatprep.mubr.bf16.mxu1 %v3638_v1  ;;  %v3361_v63 = vld [vmem:[#allocation6 + $0x22c] ss:$16 sps:$4 sm:$0xff]   ;;  %v3355_v0 = vld [vmem:[#allocation6 + $0x128] ss:$16 sps:$4 sm:$0xff]  }
  0xa2   :  { %1627 = vmatpush2.bf16.msra.mxu0 %v3290_v3  ;;  %v3359_v3 = vld [vmem:[#allocation6 + $0x228] ss:$16 sps:$4 sm:$0xff]  }
  0xa3   :  { %1757 = vmatpush1.bf16.msra.mxu1 %v3287_v2  ;;  %1628 = vmatprep.subr.bf16.mxu0 %v3298_v5  ;;  %v3784_v2 = vld [vmem:[#allocation3 + $0xb8] ss:$28 sps:$4 sm:$0xff]   ;;  %v3367_v5 = vld [vmem:[#allocation6 + $0x20c] ss:$16 sps:$4 sm:$0xff]  }
  0xa4   :  { %1758 = vmatprep.subr.bf16.mxu1 %v3295_v4  ;;  %v3364_v4 = vld [vmem:[#allocation6 + $0x10c] ss:$16 sps:$4 sm:$0xff]  }
  0xa6   :  { %3026 = vmatmul.mubr.msk.bf16.gmra.mxu1 %vm1441_vm0, %v3761_v10  ;;  %1629 = vmatpush2.bf16.msra.mxu0 %v3296_v9  ;;  %v3365_v9 = vld [vmem:[#allocation6 + $0x208] ss:$16 sps:$4 sm:$0xff]  }
  0xa7   :  { %1759 = vmatpush1.bf16.msra.mxu1 %v3293_v6  ;;  %1630 = vmatprep.subr.bf16.mxu0 %v3304_v14  ;;  %v3362_v6 = vld [vmem:[#allocation6 + $0x108] ss:$16 sps:$4 sm:$0xff]   ;;  %v3373_v14 = vld [vmem:[#allocation6 + $0x3ec] ss:$16 sps:$4 sm:$0xff]  }
  0xa8   :  { %1760 = vmatprep.subr.bf16.mxu1 %v3301_v11  ;;  %1778 = vmatprep.mubr.bf16.mxu1 %v3694_v51  ;;  %v3329_v51 = vld [vmem:[#allocation6 + $0x2ac] ss:$16 sps:$4 sm:$0xff]  }
  0xa9   :  { %v3370_v11 = vld [vmem:[#allocation6 + $0x4ec] ss:$16 sps:$4 sm:$0xff]  }
  0xaa   :  { %1631 = vmatpush2.bf16.msra.mxu0 %v3302_v16  ;;  %v3371_v16 = vld [vmem:[#allocation6 + $0x3e8] ss:$16 sps:$4 sm:$0xff]  }
  0xab   :  { %1761 = vmatpush1.bf16.msra.mxu1 %v3299_v15  ;;  %1819 = vmatprep.subr.bf16.mxu0 %v3313_v20  ;;  %v3368_v15 = vld [vmem:[#allocation6 + $0x4e8] ss:$16 sps:$4 sm:$0xff]   ;;  %v3379_v20 = vld [vmem:[#allocation6 + $0x3cc] ss:$16 sps:$4 sm:$0xff]  }
  0xac   :  { %1762 = vmatprep.subr.bf16.mxu1 %v3310_v19  ;;  %v3376_v19 = vld [vmem:[#allocation6 + $0x4cc] ss:$16 sps:$4 sm:$0xff]  }
  0xad   :  { %1633 = vmatmul.mubr.bf16.vlgmr.msra.gmra.mxu0 %v3765_v23 }
  0xae   :  { %1820 = vmatpush1.bf16.msra.mxu0 %v3311_v27  ;;  %1642 = vmatprep.mubr.bf16.mxu0 %v3768_v32  ;;  %v3377_v27 = vld [vmem:[#allocation6 + $0x3c8] ss:$16 sps:$4 sm:$0xff]  }
  0xaf   :  { %1763 = vmatpush2.bf16.msra.mxu1 %v3308_v24  ;;  %1821 = vmatprep.subr.bf16.mxu0 %v3320_v31  ;;  %v3374_v24 = vld [vmem:[#allocation6 + $0x4c8] ss:$16 sps:$4 sm:$0xff]   ;;  %v3385_v31 = vld [vmem:[#allocation6 + $0x3ac] ss:$16 sps:$4 sm:$0xff]  }
  0xb0   :  { %1764 = vmatprep.subr.bf16.mxu1 %v3317_v28  ;;  %v3382_v28 = vld [vmem:[#allocation6 + $0x4ac] ss:$16 sps:$4 sm:$0xff]  }
  0xb2   :  { %1822 = vmatpush1.bf16.msra.mxu0 %v3318_v36  ;;  %v3388_v36 = vld [vmem:[#allocation6 + $0x48c] ss:$16 sps:$4 sm:$0xff]  }
  0xb3   :  { %1765 = vmatpush2.bf16.msra.mxu1 %v3315_v35  ;;  %1823 = vmatprep.subr.bf16.mxu0 %v3329_v51  ;;  %v3380_v35 = vld [vmem:[#allocation6 + $0x4a8] ss:$16 sps:$4 sm:$0xff]  }
  0xb4   :  { %1766 = vmatprep.subr.bf16.mxu1 %v3325_v38  ;;  %v3391_v38 = vld [vmem:[#allocation6 + $0x38c] ss:$16 sps:$4 sm:$0xff]   ;;  %v3389_v51 = vld [vmem:[#allocation6 + $0x388] ss:$16 sps:$4 sm:$0xff]  }
  0xb5   :  { %1643 = vmatmul.mubr.bf16.gmra.mxu0 %v3772_v40 }
  0xb6   :  { %1824 = vmatpush1.bf16.msra.mxu0 %v3327_v42  ;;  %1652 = vmatprep.mubr.bf16.mxu0 %v3774_v45  ;;  %v3397_v42 = vld [vmem:[#allocation6 + $0x36c] ss:$16 sps:$4 sm:$0xff]  }
  0xb7   :  { %1767 = vmatpush2.bf16.msra.mxu1 %v3323_v39  ;;  %1825 = vmatprep.subr.bf16.mxu0 %v3336_v44  ;;  %v3394_v39 = vld [vmem:[#allocation6 + $0x46c] ss:$16 sps:$4 sm:$0xff]   ;;  %v3395_v44 = vld [vmem:[#allocation6 + $0x368] ss:$16 sps:$4 sm:$0xff]  }
  0xb8   :  { %1768 = vmatprep.subr.bf16.mxu1 %v3333_v43  ;;  %v3392_v43 = vld [vmem:[#allocation6 + $0x468] ss:$16 sps:$4 sm:$0xff]  }
  0xba   :  { %1826 = vmatpush1.bf16.msra.mxu0 %v3334_v47  ;;  %v3401_v47 = vld [vmem:[#allocation6 + $0x348] ss:$16 sps:$4 sm:$0xff]  }
  0xbb   :  { %1769 = vmatpush2.bf16.msra.mxu1 %v3331_v46  ;;  %1827 = vmatprep.subr.bf16.mxu0 %v3345_v49  ;;  %v3403_v46 = vld [vmem:[#allocation6 + $0x34c] ss:$16 sps:$4 sm:$0xff]  }
  0xbc   :  { %1770 = vmatprep.subr.bf16.mxu1 %v3341_v48  ;;  %v3406_v48 = vld [vmem:[#allocation6 + $0x42c] ss:$16 sps:$4 sm:$0xff]  }
  0xbd   :  { %1653 = vmatmul.mubr.bf16.gmra.mxu0 %v3778_v54  ;;  %v3409_v49 = vld [vmem:[#allocation6 + $0x32c] ss:$16 sps:$4 sm:$0xff]  }
  0xbe   :  { %1828 = vmatpush1.bf16.msra.mxu0 %v3343_v55  ;;  %1662 = vmatprep.mubr.bf16.mxu0 %v3780_v58  ;;  %v3412_v55 = vld [vmem:[#allocation6 + $0x40c] ss:$16 sps:$4 sm:$0xff]  }
  0xbf   :  { %1771 = vmatpush2.bf16.msra.mxu1 %v3339_v52  ;;  %1829 = vmatprep.subr.bf16.mxu0 %v3352_v57  ;;  %v3407_v52 = vld [vmem:[#allocation6 + $0x328] ss:$16 sps:$4 sm:$0xff]  }
  0xc0   :  { %1772 = vmatprep.subr.bf16.mxu1 %v3349_v56  ;;  %v3415_v56 = vld [vmem:[#allocation6 + $0x30c] ss:$16 sps:$4 sm:$0xff]   ;;  %v3413_v57 = vld [vmem:[#allocation6 + $0x308] ss:$16 sps:$4 sm:$0xff]  }
  0xc2   :  { %1830 = vmatpush1.bf16.msra.mxu0 %v3350_v60  ;;  %v3421_v60 = vld [vmem:[#allocation6 + $0x60c] ss:$16 sps:$4 sm:$0xff]  }
  0xc3   :  { %1773 = vmatpush2.bf16.msra.mxu1 %v3347_v59  ;;  %1831 = vmatprep.subr.bf16.mxu0 %v3361_v63  ;;  %v3418_v59 = vld [vmem:[#allocation6 + $0x5ec] ss:$16 sps:$4 sm:$0xff]  }
  0xc4   :  { %1774 = vmatprep.subr.bf16.mxu1 %v3357_v62  ;;  %v3419_v62 = vld [vmem:[#allocation6 + $0x608] ss:$16 sps:$4 sm:$0xff]   ;;  %v3424_v63 = vld [vmem:[#allocation6 + $0x5cc] ss:$16 sps:$4 sm:$0xff]  }
  0xc5   :  { %1663 = vmatmul.mubr.bf16.gmra.mxu0 %v3784_v2 }
  0xc6   :  { %1832 = vmatpush1.bf16.msra.mxu0 %v3359_v3  ;;  %1851 = vmatprep.mubr.bf16.mxu0 %v3696_v53  ;;  %v3383_v53 = vld [vmem:[#allocation6 + $0x3a8] ss:$16 sps:$4 sm:$0xff]   ;;  %v3427_v3 = vld [vmem:[#allocation6 + $0x5ac] ss:$16 sps:$4 sm:$0xff]  }
  0xc7   :  { %1775 = vmatpush2.bf16.msra.mxu1 %v3355_v0  ;;  %1833 = vmatprep.subr.bf16.mxu0 %v3367_v5  ;;  %v3445_v0 = vld [vmem:[#allocation8 + $0x74] ss:$8 sps:$4 sm:$0xff]   ;;  %v3428_v5 = vld [vmem:[#allocation6 + $0x588] ss:$16 sps:$4 sm:$0xff]  }
  0xc8   :  { %1776 = vmatprep.subr.bf16.mxu1 %v3364_v4  ;;  %v3430_v4 = vld [vmem:[#allocation6 + $0x58c] ss:$16 sps:$4 sm:$0xff]  }
  0xca   :  { %1834 = vmatpush1.bf16.msra.mxu0 %v3365_v9  ;;  %v3436_v9 = vld [vmem:[#allocation6 + $0x54c] ss:$16 sps:$4 sm:$0xff]  }
  0xcb   :  { %1777 = vmatpush2.bf16.msra.mxu1 %v3362_v6  ;;  %1835 = vmatprep.subr.bf16.mxu0 %v3373_v14  ;;  %v3431_v6 = vld [vmem:[#allocation6 + $0x568] ss:$16 sps:$4 sm:$0xff]   ;;  %v3442_v14 = vld [vmem:[#allocation6 + $0x50c] ss:$16 sps:$4 sm:$0xff]  }
  0xcc   :  { %1892 = vmatprep.subr.bf16.mxu1 %v3370_v11  ;;  %v3439_v11 = vld [vmem:[#allocation6 + $0x52c] ss:$16 sps:$4 sm:$0xff]  }
  0xce   :  { %1779 = vmatmul.mubr.bf16.vlgmr.msra.gmra.mxu1 %v3700_v7  ;;  %1836 = vmatpush2.bf16.msra.mxu0 %v3371_v16  ;;  %v3386_v7 = vld [vmem:[#allocation6 + $0x488] ss:$16 sps:$4 sm:$0xff]  }
  0xcf   :  { %1893 = vmatpush1.bf16.msra.mxu1 %v3368_v15  ;;  %1837 = vmatprep.subr.bf16.mxu0 %v3379_v20  ;;  %v3443_v15 = vld [vmem:[#allocation8 + $0x70] ss:$8 sps:$4 sm:$0xff]   ;;  %v3493_v20 = vld [vmem:[#allocation8 + $0x174] ss:$8 sps:$4 sm:$0xff]  }
  0xd0   :  { %1894 = vmatprep.subr.bf16.mxu1 %v3376_v19  ;;  %1788 = vmatprep.mubr.bf16.mxu1 %v3704_v12  ;;  %v3400_v12 = vld [vmem:[#allocation6 + $0x44c] ss:$16 sps:$4 sm:$0xff]   ;;  %v3449_v16 = vld [vmem:[#allocation8 + $0x50] ss:$8 sps:$4 sm:$0xff]  }
  0xd1   :  { %v3454_v19 = vld [vmem:[#allocation8 + $0x44] ss:$8 sps:$4 sm:$0xff]  }
  0xd2   :  { %1838 = vmatpush2.bf16.msra.mxu0 %v3377_v27  ;;  %v3455_v27 = vld [vmem:[#allocation8 + $0x30] ss:$8 sps:$4 sm:$0xff]  }
  0xd3   :  { %1895 = vmatpush1.bf16.msra.mxu1 %v3374_v24  ;;  %1839 = vmatprep.subr.bf16.mxu0 %v3385_v31  ;;  %v3496_v24 = vld [vmem:[#allocation8 + $0x164] ss:$8 sps:$4 sm:$0xff]   ;;  %v3497_v31 = vld [vmem:[#allocation8 + $0x150] ss:$8 sps:$4 sm:$0xff]  }
  0xd4   :  { %1896 = vmatprep.subr.bf16.mxu1 %v3382_v28  ;;  %v3494_v28 = vld [vmem:[#allocation8 + $0x160] ss:$8 sps:$4 sm:$0xff]  }
  0xd6   :  { %1789 = vmatmul.mubr.bf16.gmra.mxu1 %v3712_v17  ;;  %1840 = vmatpush2.bf16.msra.mxu0 %v3383_v53  ;;  %v3398_v17 = vld [vmem:[#allocation6 + $0x448] ss:$16 sps:$4 sm:$0xff]   ;;  %v3502_v53 = vld [vmem:[#allocation8 + $0x144] ss:$8 sps:$4 sm:$0xff]  }
  0xd7   :  { %1897 = vmatpush1.bf16.msra.mxu1 %v3380_v35  ;;  %1841 = vmatprep.subr.bf16.mxu0 %v3391_v38  ;;  %v3463_v35 = vld [vmem:[#allocation8 + $0x14] ss:$8 sps:$4 sm:$0xff]   ;;  %v3500_v38 = vld [vmem:[#allocation8 + $0x140] ss:$8 sps:$4 sm:$0xff]  }
  0xd8   :  { %1898 = vmatprep.subr.bf16.mxu1 %v3388_v36  ;;  %1798 = vmatprep.mubr.bf16.mxu1 %v3716_v21  ;;  %v3404_v21 = vld [vmem:[#allocation6 + $0x428] ss:$16 sps:$4 sm:$0xff]  }
  0xd9   :  { %v3461_v36 = vld [vmem:[#allocation8 + $0x10] ss:$8 sps:$4 sm:$0xff]  }
  0xda   :  { %1842 = vmatpush2.bf16.msra.mxu0 %v3389_v51 }
  0xdb   :  { %1899 = vmatpush1.bf16.msra.mxu1 %v3386_v7  ;;  %1843 = vmatprep.subr.bf16.mxu0 %v3397_v42  ;;  %v3472_v7 = vld [vmem:[#allocation8 + $0xe4] ss:$8 sps:$4 sm:$0xff]   ;;  %v3503_v42 = vld [vmem:[#allocation8 + $0x130] ss:$8 sps:$4 sm:$0xff]  }
  0xdc   :  { %1900 = vmatprep.subr.bf16.mxu1 %v3394_v39  ;;  %v3505_v39 = vld [vmem:[#allocation8 + $0x134] ss:$8 sps:$4 sm:$0xff]  }
  0xde   :  { %1799 = vmatmul.mubr.bf16.gmra.mxu1 %v3724_v25  ;;  %1844 = vmatpush2.bf16.msra.mxu0 %v3395_v44  ;;  %v3410_v25 = vld [vmem:[#allocation6 + $0x408] ss:$16 sps:$4 sm:$0xff]  }
  0xdf   :  { %1901 = vmatpush1.bf16.msra.mxu1 %v3392_v43  ;;  %1845 = vmatprep.subr.bf16.mxu0 %v3403_v46  ;;  %v3508_v46 = vld [vmem:[#allocation8 + $0x124] ss:$8 sps:$4 sm:$0xff]  }
  0xe0   :  { %1902 = vmatprep.subr.bf16.mxu1 %v3400_v12  ;;  %1808 = vmatprep.mubr.bf16.mxu1 %v3728_v29  ;;  %v3416_v29 = vld [vmem:[#allocation6 + $0x5e8] ss:$16 sps:$4 sm:$0xff]  }
  0xe2   :  { %1846 = vmatpush2.bf16.msra.mxu0 %v3401_v47 }
  0xe3   :  { %1903 = vmatpush1.bf16.msra.mxu1 %v3398_v17  ;;  %1847 = vmatprep.subr.bf16.mxu0 %v3409_v49  ;;  %v3506_v17 = vld [vmem:[#allocation8 + $0x120] ss:$8 sps:$4 sm:$0xff]   ;;  %v3473_v49 = vld [vmem:[#allocation8 + $0xd0] ss:$8 sps:$4 sm:$0xff]  }
  0xe4   :  { %1904 = vmatprep.subr.bf16.mxu1 %v3406_v48 }
  0xe6   :  { %1809 = vmatmul.mubr.bf16.gmra.mxu1 %v3736_v33  ;;  %1848 = vmatpush2.bf16.msra.mxu0 %v3407_v52  ;;  %v3422_v33 = vld [vmem:[#allocation6 + $0x5c8] ss:$16 sps:$4 sm:$0xff]  }
  0xe7   :  { %1905 = vmatpush1.bf16.msra.mxu1 %v3404_v21  ;;  %1849 = vmatprep.subr.bf16.mxu0 %v3415_v56  ;;  %v3478_v21 = vld [vmem:[#allocation8 + $0xc4] ss:$8 sps:$4 sm:$0xff]   ;;  %v3509_v56 = vld [vmem:[#allocation8 + $0x110] ss:$8 sps:$4 sm:$0xff]  }
  0xe8   :  { %1906 = vmatprep.subr.bf16.mxu1 %v3412_v55  ;;  %1924 = vmatprep.mubr.bf16.mxu1 %v3740_v37  ;;  %v3425_v37 = vld [vmem:[#allocation6 + $0x5a8] ss:$16 sps:$4 sm:$0xff]   ;;  %v3511_v55 = vld [vmem:[#allocation8 + $0x114] ss:$8 sps:$4 sm:$0xff]  }
  0xea   :  { %1850 = vmatpush2.bf16.msra.mxu0 %v3413_v57 }
  0xeb   :  { %1907 = vmatpush1.bf16.msra.mxu1 %v3410_v25  ;;  %1979 = vmatprep.subr.bf16.mxu0 %v3421_v60  ;;  %v3481_v60 = vld [vmem:[#allocation8 + $0xb4] ss:$8 sps:$4 sm:$0xff]  }
  0xec   :  { %1908 = vmatprep.subr.bf16.mxu1 %v3418_v59  ;;  %v3476_v59 = vld [vmem:[#allocation8 + $0xc0] ss:$8 sps:$4 sm:$0xff]  }
  0xed   :  { %1852 = vmatmul.mubr.bf16.vlgmr.msra.gmra.mxu0 %v3702_v8  ;;  %v3433_v8 = vld [vmem:[#allocation6 + $0x56c] ss:$16 sps:$4 sm:$0xff]  }
  0xee   :  { %1980 = vmatpush1.bf16.msra.mxu0 %v3419_v62  ;;  %1861 = vmatprep.mubr.bf16.mxu0 %v3706_v13  ;;  %v3434_v13 = vld [vmem:[#allocation6 + $0x548] ss:$16 sps:$4 sm:$0xff]   ;;  %v3514_v62 = vld [vmem:[#allocation8 + $0x104] ss:$8 sps:$4 sm:$0xff]  }
  0xef   :  { %1909 = vmatpush2.bf16.msra.mxu1 %v3416_v29  ;;  %2514 = vmatprep.subr.bf16.mxu0 %v3445_v0 }
  0xf0   :  { %1910 = vmatprep.subr.bf16.mxu1 %v3424_v63  ;;  %v3512_v63 = vld [vmem:[#allocation8 + $0x100] ss:$8 sps:$4 sm:$0xff]  }
  0xf3   :  { %1911 = vmatpush2.bf16.msra.mxu1 %v3422_v33 }
  0xf4   :  { %1912 = vmatprep.subr.bf16.mxu1 %v3427_v3  ;;  %v3479_v3 = vld [vmem:[#allocation8 + $0xb0] ss:$8 sps:$4 sm:$0xff]  }
  0xf5   :  { %1862 = vmatmul.mubr.bf16.gmra.mxu0 %v3714_v18  ;;  %v3437_v18 = vld [vmem:[#allocation6 + $0x528] ss:$16 sps:$4 sm:$0xff]  }
  0xf6   :  { %1871 = vmatprep.mubr.bf16.mxu0 %v3718_v22  ;;  %v3440_v22 = vld [vmem:[#allocation6 + $0x508] ss:$16 sps:$4 sm:$0xff]  }
  0xf7   :  { %1913 = vmatpush2.bf16.msra.mxu1 %v3425_v37  ;;  %v3484_v37 = vld [vmem:[#allocation8 + $0xa4] ss:$8 sps:$4 sm:$0xff]  }
  0xf8   :  { %1914 = vmatprep.subr.bf16.mxu1 %v3430_v4 }
  0xfb   :  { %1915 = vmatpush2.bf16.msra.mxu1 %v3428_v5  ;;  %v3517_v5 = vld [vmem:[#allocation8 + $0x1f4] ss:$8 sps:$4 sm:$0xff]  }
  0xfc   :  { %1916 = vmatprep.subr.bf16.mxu1 %v3433_v8  ;;  %v3515_v8 = vld [vmem:[#allocation8 + $0x1f0] ss:$8 sps:$4 sm:$0xff]  }
  0xfd   :  { %1872 = vmatmul.mubr.bf16.gmra.mxu0 %v3726_v26  ;;  %v3448_v26 = vld [vmem:[#allocation8 + $0x64] ss:$8 sps:$4 sm:$0xff]  }
  0xfe   :  { %1881 = vmatprep.mubr.bf16.mxu0 %v3730_v30  ;;  %v3446_v30 = vld [vmem:[#allocation8 + $0x60] ss:$8 sps:$4 sm:$0xff]  }
  0xff   :  { %1917 = vmatpush2.bf16.msra.mxu1 %v3431_v6 }
 0x100   :  { %1918 = vmatprep.subr.bf16.mxu1 %v3436_v9 }
 0x103   :  { %1919 = vmatpush2.bf16.msra.mxu1 %v3434_v13  ;;  %v3482_v13 = vld [vmem:[#allocation8 + $0xa0] ss:$8 sps:$4 sm:$0xff]  }
 0x104   :  { %1920 = vmatprep.subr.bf16.mxu1 %v3439_v11  ;;  %v3487_v11 = vld [vmem:[#allocation8 + $0x94] ss:$8 sps:$4 sm:$0xff]  }
 0x105   :  { %1882 = vmatmul.mubr.bf16.gmra.mxu0 %v3738_v34  ;;  %v3451_v34 = vld [vmem:[#allocation8 + $0x54] ss:$8 sps:$4 sm:$0xff]  }
 0x106   :  { %1997 = vmatprep.mubr.bf16.mxu0 %v3638_v1 }
 0x107   :  { %1921 = vmatpush2.bf16.msra.mxu1 %v3437_v18 }
 0x108   :  { %1922 = vmatprep.subr.bf16.mxu1 %v3442_v14  ;;  %v3520_v14 = vld [vmem:[#allocation8 + $0x1e4] ss:$8 sps:$4 sm:$0xff]  }
 0x10b   :  { %1923 = vmatpush2.bf16.msra.mxu1 %v3440_v22  ;;  %v3518_v22 = vld [vmem:[#allocation8 + $0x1e0] ss:$8 sps:$4 sm:$0xff]  }
 0x10c   :  { %2587 = vmatprep.subr.bf16.mxu1 %v3493_v20  ;;  %v3488_v20 = vld [vmem:[#allocation8 + $0x80] ss:$8 sps:$4 sm:$0xff]  }
 0x10d   :  { %3027 = vmatmul.mubr.msk.bf16.vlgmr.msra.gmra.mxu0 %vm1441_vm0, %v3746_v41  ;;  %v3452_v41 = vld [vmem:[#allocation8 + $0x40] ss:$8 sps:$4 sm:$0xff]  }
 0x10e   :  { %1925 = vmatmul.mubr.bf16.vlgmr.msra.gmra.mxu1 %v3765_v23  ;;  %2007 = vmatprep.mubr.bf16.mxu0 %v3638_v1  ;;  %v3457_v23 = vld [vmem:[#allocation8 + $0x34] ss:$8 sps:$4 sm:$0xff]  }
 0x10f   :  { %1934 = vmatprep.mubr.bf16.mxu1 %v3768_v32  ;;  %2515 = vmatpush1.bf16.msra.mxu0 %v3443_v15  ;;  %v3491_v32 = vld [vmem:[#allocation8 + $0x170] ss:$8 sps:$4 sm:$0xff]  }
 0x110   :  { %2516 = vmatprep.subr.bf16.mxu0 %v3448_v26  ;;  %2588 = vmatpush1.bf16.msra.mxu1 %v3491_v32 }
 0x111   :  { %2589 = vmatprep.subr.bf16.mxu1 %v3496_v24  ;;  %v3526_v24 = vld [vmem:[#allocation8 + $0x1c4] ss:$8 sps:$4 sm:$0xff]  }
 0x113   :  { %2517 = vmatpush1.bf16.msra.mxu0 %v3446_v30  ;;  %v3485_v30 = vld [vmem:[#allocation8 + $0x90] ss:$8 sps:$4 sm:$0xff]  }
 0x114   :  { %2518 = vmatprep.subr.bf16.mxu0 %v3451_v34  ;;  %2590 = vmatpush1.bf16.msra.mxu1 %v3494_v28  ;;  %v3490_v34 = vld [vmem:[#allocation8 + $0x84] ss:$8 sps:$4 sm:$0xff]  }
 0x115   :  { %3028 = vmatmul.mubr.msk.bf16.gmra.mxu0 %vm1441_vm0, %v3751_v50  ;;  %v3499_v50 = vld [vmem:[#allocation8 + $0x154] ss:$8 sps:$4 sm:$0xff]  }
 0x116   :  { %1935 = vmatmul.mubr.bf16.gmra.mxu1 %v3772_v40  ;;  %2017 = vmatprep.mubr.bf16.mxu0 %v3638_v1  ;;  %v3460_v40 = vld [vmem:[#allocation8 + $0x24] ss:$8 sps:$4 sm:$0xff]  }
 0x117   :  { %1944 = vmatprep.mubr.bf16.mxu1 %v3774_v45  ;;  %2519 = vmatpush1.bf16.msra.mxu0 %v3449_v16  ;;  %v3458_v45 = vld [vmem:[#allocation8 + $0x20] ss:$8 sps:$4 sm:$0xff]  }
 0x118   :  { %2520 = vmatprep.subr.bf16.mxu0 %v3454_v19  ;;  %2591 = vmatprep.subr.bf16.mxu1 %v3499_v50  ;;  %v3523_v19 = vld [vmem:[#allocation8 + $0x1d4] ss:$8 sps:$4 sm:$0xff]  }
 0x119   :  { %2592 = vmatpush1.bf16.msra.mxu1 %v3497_v31  ;;  %v3529_v50 = vld [vmem:[#allocation8 + $0x1b4] ss:$8 sps:$4 sm:$0xff]  }
 0x11a   :  { %2593 = vmatprep.subr.bf16.mxu1 %v3502_v53  ;;  %v3532_v53 = vld [vmem:[#allocation8 + $0x1a4] ss:$8 sps:$4 sm:$0xff]  }
 0x11b   :  { %2521 = vmatpush1.bf16.msra.mxu0 %v3452_v41  ;;  %v3521_v41 = vld [vmem:[#allocation8 + $0x1d0] ss:$8 sps:$4 sm:$0xff]  }
 0x11c   :  { %2522 = vmatprep.subr.bf16.mxu0 %v3457_v23 }
 0x11d   :  { %3029 = vmatmul.mubr.msk.bf16.gmra.mxu0 %vm1441_vm0, %v3756_v61  ;;  %2594 = vmatpush1.bf16.msra.mxu1 %v3500_v38  ;;  %v3469_v61 = vld [vmem:[#allocation8 + $0xf4] ss:$8 sps:$4 sm:$0xff]  }
 0x11e   :  { %1945 = vmatmul.mubr.bf16.gmra.mxu1 %v3778_v54  ;;  %2027 = vmatprep.mubr.bf16.mxu0 %v3638_v1  ;;  %v3466_v54 = vld [vmem:[#allocation8 + $0x4] ss:$8 sps:$4 sm:$0xff]   ;;  %v3464_v1 = vld [vmem:[#allocation8] ss:$8 sps:$4 sm:$0xff]  }
 0x11f   :  { %1954 = vmatprep.mubr.bf16.mxu1 %v3780_v58  ;;  %2523 = vmatpush1.bf16.msra.mxu0 %v3455_v27  ;;  %v3467_v58 = vld [vmem:[#allocation8 + $0xf0] ss:$8 sps:$4 sm:$0xff]   ;;  %v3524_v27 = vld [vmem:[#allocation8 + $0x1c0] ss:$8 sps:$4 sm:$0xff]  }
 0x120   :  { %2524 = vmatprep.subr.bf16.mxu0 %v3460_v40  ;;  %2595 = vmatprep.subr.bf16.mxu1 %v3505_v39  ;;  %v301_v39 = vlaneseq }
 0x121   :  { %2596 = vmatpush1.bf16.msra.mxu1 %v3503_v42  ;;  %v3538_v42 = vld [vmem:[#allocation8 + $0x184] ss:$8 sps:$4 sm:$0xff]  }
 0x122   :  { %2597 = vmatprep.subr.bf16.mxu1 %v3508_v46  ;;  %v3536_v46 = vld [vmem:[#allocation8 + $0x180] ss:$8 sps:$4 sm:$0xff]  }
 0x123   :  { %2525 = vmatpush1.bf16.msra.mxu0 %v3458_v45  ;;  %v3527_v45 = vld [vmem:[#allocation8 + $0x1b0] ss:$8 sps:$4 sm:$0xff]  }
 0x124   :  { %2526 = vmatprep.subr.bf16.mxu0 %v3463_v35 }
 0x125   :  { %3030 = vmatmul.mubr.msk.bf16.gmra.mxu0 %vm1441_vm0, %v3761_v10  ;;  %v3475_v10 = vld [vmem:[#allocation8 + $0xd4] ss:$8 sps:$4 sm:$0xff]   ;;  %2598 = vmatpush1.bf16.msra.mxu1 %v3506_v17  ;;  %v3878_v17 = vshrl.u32 %v301_v39, 7 }
 0x126   :  { %1955 = vmatmul.mubr.bf16.gmra.mxu1 %v3784_v2  ;;  %v3470_v2 = vld [vmem:[#allocation8 + $0xe0] ss:$8 sps:$4 sm:$0xff]   ;;  %2599 = vmatprep.subr.bf16.mxu1 %v3511_v55 }
 0x127   :  { %2527 = vmatpush1.bf16.msra.mxu0 %v3461_v36  ;;  %v3530_v36 = vld [vmem:[#allocation8 + $0x1a0] ss:$8 sps:$4 sm:$0xff]   ;;  %v3883_v55 = vsub.s32 0, %v3878_v17 }
 0x128   :  { %2528 = vmatprep.subr.bf16.mxu0 %v3466_v54 }
 0x129   :  { %2600 = vmatpush1.bf16.msra.mxu1 %v3509_v56 }
 0x12a   :  { %2601 = vmatprep.subr.bf16.mxu1 %v3514_v62 }
 0x12b   :  { %2529 = vmatpush1.bf16.msra.mxu0 %v3464_v1  ;;  %v3535_v1 = vld [vmem:[#allocation8 + $0x194] ss:$8 sps:$4 sm:$0xff]  }
 0x12c   :  { %2530 = vmatprep.subr.bf16.mxu0 %v3469_v61  ;;  %v3533_v61 = vld [vmem:[#allocation8 + $0x190] ss:$8 sps:$4 sm:$0xff]  }
 0x12d   :  { %v3824_v43 = vpop.f32.mrf.mxu0  ;;  %2602 = vmatpush1.bf16.msra.mxu1 %v3512_v63 }
 0x12e   :  { %v3822_v51 = vpop.f32.mrf.mxu1  ;;  %2603 = vmatprep.subr.bf16.mxu1 %v3517_v5 }
 0x12f   :  { %2531 = vmatpush2.bf16.msra.mxu0 %v3467_v58  ;;  %v3830_v47 = vpop.f32.mrf.mxu0 }
 0x130   :  { %v3826_v44 = vpop.f32.mrf.mxu1  ;;  %2532 = vmatprep.subr.bf16.mxu0 %v3472_v7 }
 0x131   :  { %v3836_v25 = vpop.f32.mrf.mxu0  ;;  %2604 = vmatpush2.bf16.msra.mxu1 %v3515_v8 }
 0x132   :  { %v3828_v12 = vpop.f32.mrf.mxu1  ;;  %2605 = vmatprep.subr.bf16.mxu1 %v3520_v14 }
 0x133   :  { %2533 = vmatpush2.bf16.msra.mxu0 %v3470_v2  ;;  %v3842_v0 = vpop.f32.mrf.mxu0 }
 0x134   :  { %v3832_v48 = vpop.f32.mrf.mxu1  ;;  %2534 = vmatprep.subr.bf16.mxu0 %v3475_v10 }
 0x135   :  { %v3848_v6 = vpop.f32.mrf.mxu0  ;;  %2606 = vmatpush2.bf16.msra.mxu1 %v3518_v22 }
 0x136   :  { %v3834_v52 = vpop.f32.mrf.mxu1  ;;  %2607 = vmatprep.subr.bf16.mxu1 %v3523_v19 }
 0x137   :  { %2535 = vmatpush2.bf16.msra.mxu0 %v3473_v49  ;;  %v3854_v15 = vpop.f32.mrf.mxu0 }
 0x138   :  { %v3838_v57 = vpop.f32.mrf.mxu1  ;;  %2536 = vmatprep.subr.bf16.mxu0 %v3478_v21 }
 0x139   :  { %v3860_v23 = vpop.f32.mrf.mxu0  ;;  %2608 = vmatpush2.bf16.msra.mxu1 %v3521_v41 }
 0x13a   :  { %v3840_v29 = vpop.f32.mrf.mxu1  ;;  %2609 = vmatprep.subr.bf16.mxu1 %v3526_v24 }
 0x13b   :  { %2537 = vmatpush2.bf16.msra.mxu0 %v3476_v59  ;;  %v3864_v28 = vpop.f32.mrf.mxu0  ;;  %v3888_v59 = vld [vmem:[%s4106_s2] sm:$0xf] }
 0x13c   :  { %v3844_v33 = vpop.f32.mrf.mxu1  ;;  %2538 = vmatprep.subr.bf16.mxu0 %v3481_v60  ;;  %v307_v60 = vsub.s32 1, %v3878_v17  ;;  %v3895_v63 = vrot.slane %v3888_v59, %v3883_v55 }
 0x13d   :  { %2610 = vmatpush2.bf16.msra.mxu1 %v3524_v27  ;;  %v3868_v31 = vpop.f32.mrf.mxu0 }
 0x13e   :  { %v3846_v4 = vpop.f32.mrf.mxu1  ;;  %2611 = vmatprep.subr.bf16.mxu1 %v3529_v50  ;;  %v1489_v8 = vadd.f32 %v3824_v43, %v3895_v63  ;;  %v1493_v22 = vadd.f32 %v3836_v25, %v3895_v63 }
 0x13f   :  { %2539 = vmatpush2.bf16.msra.mxu0 %v3479_v3  ;;  %v3872_v38 = vpop.f32.mrf.mxu0 }
 0x140   :  { %v3850_v9 = vpop.f32.mrf.mxu1  ;;  %2540 = vmatprep.subr.bf16.mxu0 %v3484_v37  ;;  %v3900_v37 = vrot.slane %v3888_v59, %v307_v60  ;;  %v1566_v27 = vadd.f32 %v3828_v12, %v1493_v22 }
 0x141   :  { %2612 = vmatpush2.bf16.msra.mxu1 %v3527_v45  ;;  %v3874_v58 = vpop.f32.mrf.mxu0 }
 0x142   :  { %v3852_v18 = vpop.f32.mrf.mxu1  ;;  %2613 = vmatprep.subr.bf16.mxu1 %v3532_v53  ;;  %v1501_v25 = vadd.f32 %v3854_v15, %v3900_v37 }
 0x143   :  { %2541 = vmatpush2.bf16.msra.mxu0 %v3482_v13  ;;  %v3876_v2 = vpop.f32.mrf.mxu0 }
 0x144   :  { %v3856_v26 = vpop.f32.mrf.mxu1  ;;  %2542 = vmatprep.subr.bf16.mxu0 %v3487_v11  ;;  %v1491_v11 = vadd.f32 %v3830_v47, %v3900_v37  ;;  %v1499_v47 = vadd.f32 %v3848_v6, %v3895_v63  ;;  %v1505_v6 = vadd.f32 %v3864_v28, %v3900_v37  ;;  %v1509_v28 = vadd.f32 %v3868_v31, %v3895_v63 }
 0x145   :  { %2614 = vmatpush2.bf16.msra.mxu1 %v3530_v36  ;;  %v3880_v49 = vpop.f32.mrf.mxu0 }
 0x146   :  { %v3858_v16 = vpop.f32.mrf.mxu1  ;;  %2615 = vmatprep.subr.bf16.mxu1 %v3535_v1  ;;  %v1564_v41 = vadd.f32 %v3826_v44, %v1491_v11  ;;  %v1572_v12 = vadd.f32 %v3834_v52, %v1499_v47 }
 0x147   :  { %2543 = vmatpush2.bf16.msra.mxu0 %v3485_v30  ;;  %v3891_v62 = vpop.f32.mrf.mxu0  ;;  %v1562_v30 = vadd.f32 %v3822_v51, %v1489_v8 }
 0x148   :  { %v3862_v32 = vpop.f32.mrf.mxu1  ;;  %2544 = vmatprep.subr.bf16.mxu0 %v3490_v34 }
 0x149   :  { %2616 = vmatpush2.bf16.msra.mxu1 %v3533_v61  ;;  %v3902_v5 = vpop.f32.mrf.mxu0 }
 0x14a   :  { %v3866_v40 = vpop.f32.mrf.mxu1  ;;  %2617 = vmatprep.subr.bf16.mxu1 %v3538_v42  ;;  %v1503_v42 = vadd.f32 %v3860_v23, %v3895_v63 }
 0x14b   :  { %2545 = vmatpush2.bf16.msra.mxu0 %v3488_v20  ;;  %v3908_v14 = vpop.f32.mrf.mxu0  ;;  %v1495_v20 = vadd.f32 %v3842_v0, %v3900_v37 }
 0x14c   :  { %v3870_v35 = vpop.f32.mrf.mxu1  ;;  %v1576_v52 = vadd.f32 %v3840_v29, %v1503_v42 }
 0x14d   :  { %2618 = vmatpush2.bf16.msra.mxu1 %v3536_v46  ;;  %v1568_v51 = vadd.f32 %v3832_v48, %v1495_v20  ;;  %v1574_v48 = vadd.f32 %v3838_v57, %v1501_v25  ;;  %v1511_v57 = vadd.f32 %v3872_v38, %v3900_v37  ;;  %v1582_v38 = vadd.f32 %v3846_v4, %v1509_v28 }
 0x14e   :  { %v1707_v54 = vpop.f32.mrf.mxu1 }
 0x150   :  { %v1709_v7 = vpop.f32.mrf.mxu1 }
 0x152   :  { %v1711_v10 = vpop.f32.mrf.mxu1 }
 0x154   :  { %v1713_v21 = vpop.f32.mrf.mxu1 }
 0x156   :  { %v1717_v56 = vpop.f32.mrf.mxu1 }
 0x158   :  { %v1719_v3 = vpop.f32.mrf.mxu1 }
 0x15a   :  { %v1721_v13 = vpop.f32.mrf.mxu1 }
 0x15c   :  { %v1723_v19 = vpop.f32.mrf.mxu1 }
 0x15e   :  { %v3919_v53 = vpop.f32.mrf.mxu1 }
 0x160   :  { %v1729_v8 = vpop.f32.mrf.mxu1 }
 0x16d   :  { %v1634_v34 = vpop.f32.mrf.mxu0 }
 0x16e   :  { %v1635_v24 = vadd.f32 %v1634_v34, %v1562_v30 }
 0x16f   :  { %v1636_v43 = vpop.f32.mrf.mxu0 }
 0x170   :  { %v1637_v50 = vadd.f32 %v1636_v43, %v1564_v41  ;;  %v1708_v1 = vadd.f32 %v1707_v54, %v1635_v24  ;;  %v1578_v41 = vadd.f32 %v3844_v33, %v1505_v6  ;;  %v1731_v24 = vpop.f32.mrf.mxu1 }
 0x171   :  { %v1638_v45 = vpop.f32.mrf.mxu0 }
 0x172   :  { %v1710_v44 = vadd.f32 %v1709_v7, %v1637_v50  ;;  %v1639_v36 = vadd.f32 %v1638_v45, %v1566_v27  ;;  %v2038_v22 = vmul.f32 0.2, %v1708_v1  ;;  %v1513_v27 = vadd.f32 %v3874_v58, %v3895_v63 }
 0x173   :  { %v1640_v0 = vpop.f32.mrf.mxu0 }
 0x174   :  { %v1712_v61 = vadd.f32 %v1711_v10, %v1639_v36  ;;  %v1641_v39 = vadd.f32 %v1640_v0, %v1568_v51  ;;  %v2039_v11 = vmul.f32 0.2, %v1710_v44  ;;  %v2070_v50 = vmax.f32 %v1708_v1, %v2038_v22 }
 0x175   :  { %v1644_v46 = vpop.f32.mrf.mxu0  ;;  %v1515_v36 = vadd.f32 %v3876_v2, %v3900_v37  ;;  %v1586_v58 = vadd.f32 %v3852_v18, %v1513_v27 }
 0x176   :  { %v2042_v15 = vmul.f32 0.2, %v1712_v61  ;;  %v1714_v7 = vadd.f32 %v1713_v21, %v1641_v39  ;;  %v1645_v10 = vadd.f32 %v1644_v46, %v1572_v12  ;;  %v2071_v43 = vmax.f32 %v1710_v44, %v2039_v11  ;;  %v1733_v39 = vpop.f32.mrf.mxu1 }
 0x177   :  { %v1646_v54 = vpop.f32.mrf.mxu0  ;;  %v1584_v44 = vadd.f32 %v3850_v9, %v1511_v57  ;;  %v1521_v9 = vadd.f32 %v3891_v62, %v3900_v37 }
 0x178   :  { %v2043_v30 = vmul.f32 0.2, %v1714_v7  ;;  %v1647_v34 = vadd.f32 %v1646_v54, %v1574_v48  ;;  %v2074_v23 = vmax.f32 %v1712_v61, %v2042_v15  ;;  %v1718_v51 = vadd.f32 %v1717_v56, %v1645_v10  ;;  %v1737_v4 = vpop.f32.mrf.mxu1 }
 0x179   :  { %v1648_v20 = vpop.f32.mrf.mxu0  ;;  %v1519_v48 = vadd.f32 %v3880_v49, %v3895_v63  ;;  %v1594_v28 = vadd.f32 %v3862_v32, %v1521_v9 }
 0x17a   :  { %v2075_v21 = vmax.f32 %v1714_v7, %v2043_v30  ;;  %v1720_v47 = vadd.f32 %v1719_v3, %v1647_v34  ;;  %v1649_v45 = vadd.f32 %v1648_v20, %v1576_v52  ;;  %v2102_v0 = vpack.c.bf16 %v2074_v23, %v2070_v50  ;;  %v1739_v62 = vpop.f32.mrf.mxu1 }
 0x17b   :  { %v1650_v29 = vpop.f32.mrf.mxu0  ;;  %v2046_v42 = vmul.f32 0.2, %v1718_v51  ;;  %v1523_v7 = vadd.f32 %v3902_v5, %v3895_v63  ;;  %v1592_v49 = vadd.f32 %v3858_v16, %v1519_v48 }
 0x17c   :  { %v1651_v33 = vadd.f32 %v1650_v29, %v1578_v41  ;;  %v2103_v25 = vpack.c.bf16 %v2075_v21, %v2071_v43  ;;  %v1722_v31 = vadd.f32 %v1721_v13, %v1649_v45  ;;  %v2047_v3 = vmul.f32 0.2, %v1720_v47 }
 0x17d   :  { %v1654_v61 = vpop.f32.mrf.mxu0  ;;  %v1588_v13 = vadd.f32 %v3856_v26, %v1515_v36  ;;  %v2078_v10 = vmax.f32 %v1718_v51, %v2046_v42  ;;  %v1525_v41 = vadd.f32 %v3908_v14, %v3900_v37  ;;  %v1741_v14 = vpop.f32.mrf.mxu1 }
 0x17e   :  { %v1724_v12 = vadd.f32 %v1723_v19, %v1651_v33  ;;  %2546 = vmatprep.mubr.bf16.mxu0 %v2103_v25  ;;  %v2050_v1 = vmul.f32 0.2, %v1722_v31  ;;  %v1655_v46 = vadd.f32 %v1654_v61, %v1582_v38  ;;  %v2079_v22 = vmax.f32 %v1720_v47, %v2047_v3 }
 0x17f   :  { %v1656_v56 = vpop.f32.mrf.mxu0  ;;  %2547 = vmatmul.mubr.bf16.vlgmr.msra.gmra.mxu0 %v2102_v0  ;;  %v1598_v37 = vadd.f32 %v3870_v35, %v1525_v41 }
 0x180   :  { %v2051_v6 = vmul.f32 0.2, %v1724_v12  ;;  %v1657_v2 = vadd.f32 %v1656_v56, %v1584_v44  ;;  %v2082_v19 = vmax.f32 %v1722_v31, %v2050_v1  ;;  %v1728_v26 = vadd.f32 %v3919_v53, %v1655_v46  ;;  %v1743_v31 = vpop.f32.mrf.mxu1 }
 0x181   :  { %v1658_v11 = vpop.f32.mrf.mxu0 }
 0x182   :  { %v2083_v18 = vmax.f32 %v1724_v12, %v2051_v6  ;;  %v1659_v15 = vadd.f32 %v1658_v11, %v1586_v58  ;;  %v1730_v54 = vadd.f32 %v1729_v8, %v1657_v2  ;;  %v2106_v5 = vpack.c.bf16 %v2082_v19, %v2078_v10 }
 0x183   :  { %v1660_v30 = vpop.f32.mrf.mxu0  ;;  %v1596_v8 = vadd.f32 %v3866_v40, %v1523_v7 }
 0x184   :  { %v1732_v34 = vadd.f32 %v1731_v24, %v1659_v15  ;;  %v1661_v52 = vadd.f32 %v1660_v30, %v1588_v13  ;;  %v2107_v20 = vpack.c.bf16 %v2083_v18, %v2079_v22  ;;  %v2055_v43 = vmul.f32 0.2, %v1730_v54 }
 0x185   :  { %v1664_v23 = vpop.f32.mrf.mxu0  ;;  %v2054_v24 = vmul.f32 0.2, %v1728_v26 }
 0x186   :  { %v2058_v57 = vmul.f32 0.2, %v1732_v34  ;;  %v1734_v63 = vadd.f32 %v1733_v39, %v1661_v52  ;;  %2556 = vmatprep.mubr.bf16.mxu0 %v2107_v20  ;;  %v1665_v27 = vadd.f32 %v1664_v23, %v1592_v49  ;;  %v2087_v51 = vmax.f32 %v1730_v54, %v2055_v43 }
 0x187   :  { %v1666_v53 = vpop.f32.mrf.mxu0  ;;  %2557 = vmatmul.mubr.bf16.gmra.mxu0 %v2106_v5  ;;  %v2086_v25 = vmax.f32 %v1728_v26, %v2054_v24  ;;  %v315_v43 = vsub.s32 3, %v3878_v17 }
 0x188   :  { %v2059_v21 = vmul.f32 0.2, %v1734_v63  ;;  %v1667_v16 = vadd.f32 %v1666_v53, %v1594_v28  ;;  %v2090_v47 = vmax.f32 %v1732_v34, %v2058_v57  ;;  %v1738_v40 = vadd.f32 %v1737_v4, %v1665_v27 }
 0x189   :  { %v1668_v50 = vpop.f32.mrf.mxu0 }
 0x18a   :  { %v2091_v45 = vmax.f32 %v1734_v63, %v2059_v21  ;;  %v1740_v32 = vadd.f32 %v1739_v62, %v1667_v16  ;;  %v1669_v29 = vadd.f32 %v1668_v50, %v1596_v8  ;;  %v2110_v12 = vpack.c.bf16 %v2090_v47, %v2086_v25 }
 0x18b   :  { %v1670_v33 = vpop.f32.mrf.mxu0  ;;  %v2062_v35 = vmul.f32 0.2, %v1738_v40  ;;  %v311_v63 = vsub.s32 2, %v3878_v17  ;;  %v3993_v16 = vrot.slane %v3888_v59, %v315_v43 }
 0x18c   :  { %v1742_v36 = vadd.f32 %v1741_v14, %v1669_v29  ;;  %v1671_v0 = vadd.f32 %v1670_v33, %v1598_v37  ;;  %v2111_v61 = vpack.c.bf16 %v2091_v45, %v2087_v51  ;;  %v2063_v39 = vmul.f32 0.2, %v1740_v32 }
 0x18d   :  { %v2094_v6 = vmax.f32 %v1738_v40, %v2062_v35  ;;  %v3986_v24 = vrot.slane %v3888_v59, %v311_v63 }
 0x18e   :  { %v2066_v38 = vmul.f32 0.2, %v1742_v36  ;;  %v1744_v44 = vadd.f32 %v1743_v31, %v1671_v0  ;;  %2566 = vmatprep.mubr.bf16.mxu0 %v2111_v61  ;;  %v1780_v3 = vpop.f32.mrf.mxu1  ;;  %v2095_v1 = vmax.f32 %v1740_v32, %v2063_v39 }
 0x18f   :  { %2567 = vmatmul.mubr.bf16.gmra.mxu0 %v2110_v12  ;;  %v1781_v14 = vadd.f32 %v1780_v3, %v3986_v24 }
 0x190   :  { %v2067_v58 = vmul.f32 0.2, %v1744_v44  ;;  %v2098_v56 = vmax.f32 %v1742_v36, %v2066_v38  ;;  %v1782_v2 = vpop.f32.mrf.mxu1 }
 0x191   :  { %v1783_v45 = vadd.f32 %v1782_v2, %v3993_v16 }
 0x192   :  { %v2099_v42 = vmax.f32 %v1744_v44, %v2067_v58  ;;  %v2114_v13 = vpack.c.bf16 %v2098_v56, %v2094_v6  ;;  %v1784_v48 = vpop.f32.mrf.mxu1 }
 0x193   :  { %v1785_v33 = vadd.f32 %v1784_v48, %v3986_v24 }
 0x194   :  { %v2115_v46 = vpack.c.bf16 %v2099_v42, %v2095_v1  ;;  %v1786_v4 = vpop.f32.mrf.mxu1 }
 0x195   :  { %v1787_v0 = vadd.f32 %v1786_v4, %v3993_v16 }
 0x196   :  { %2576 = vmatprep.mubr.bf16.mxu0 %v2115_v46  ;;  %v1790_v11 = vpop.f32.mrf.mxu1 }
 0x197   :  { %2577 = vmatmul.mubr.bf16.gmra.mxu0 %v2114_v13  ;;  %v1791_v39 = vadd.f32 %v1790_v11, %v3986_v24 }
 0x198   :  { %v1792_v9 = vpop.f32.mrf.mxu1 }
 0x199   :  { %v1793_v12 = vadd.f32 %v1792_v9, %v3993_v16 }
 0x19a   :  { %v1794_v19 = vpop.f32.mrf.mxu1 }
 0x19b   :  { %v1795_v11 = vadd.f32 %v1794_v19, %v3986_v24 }
 0x19c   :  { %v3957_v18 = vpop.f32.mrf.mxu1 }
 0x19e   :  { %v3959_v22 = vpop.f32.mrf.mxu1 }
 0x1a0   :  { %v3961_v10 = vpop.f32.mrf.mxu1 }
 0x1a2   :  { %v3963_v52 = vpop.f32.mrf.mxu1 }
 0x1a4   :  { %v3967_v62 = vpop.f32.mrf.mxu1 }
 0x1a6   :  { %v3971_v20 = vpop.f32.mrf.mxu1 }
 0x1a8   :  { %v3978_v5 = vpop.f32.mrf.mxu1 }
 0x1aa   :  { %v3988_v21 = vpop.f32.mrf.mxu1 }
 0x1ac   :  { %v3998_v50 = vpop.f32.mrf.mxu1 }
 0x1ad   :  { %v1853_v15 = vpop.f32.mrf.mxu0 }
 0x1ae   :  { %v1854_v32 = vadd.f32 %v1853_v15, %v1781_v14 }
 0x1af   :  { %v1855_v7 = vpop.f32.mrf.mxu0 }
 0x1b0   :  { %v1856_v25 = vadd.f32 %v1855_v7, %v1783_v45 }
 0x1b1   :  { %v1857_v54 = vpop.f32.mrf.mxu0 }
 0x1b2   :  { %v1858_v31 = vadd.f32 %v1857_v54, %v1785_v33 }
 0x1b3   :  { %v1859_v30 = vpop.f32.mrf.mxu0 }
 0x1b4   :  { %v1860_v35 = vadd.f32 %v1859_v30, %v1787_v0  ;;  %v1797_v30 = vadd.f32 %v3957_v18, %v3993_v16 }
 0x1b5   :  { %v1863_v26 = vpop.f32.mrf.mxu0 }
 0x1b6   :  { %v1864_v2 = vadd.f32 %v1863_v26, %v1791_v39  ;;  %v1801_v26 = vadd.f32 %v3959_v22, %v3986_v24  ;;  %v1805_v22 = vadd.f32 %v3963_v52, %v3986_v24 }
 0x1b7   :  { %v1865_v34 = vpop.f32.mrf.mxu0 }
 0x1b8   :  { %v1866_v4 = vadd.f32 %v1865_v34, %v1793_v12 }
 0x1b9   :  { %v1867_v49 = vpop.f32.mrf.mxu0 }
 0x1bb   :  { %v3965_v41 = vpop.f32.mrf.mxu0 }
 0x1bc   :  { %v1870_v19 = vadd.f32 %v3965_v41, %v1797_v30 }
 0x1bd   :  { %v3969_v23 = vpop.f32.mrf.mxu0 }
 0x1bf   :  { %v3973_v28 = vpop.f32.mrf.mxu0 }
 0x1c1   :  { %v3975_v57 = vpop.f32.mrf.mxu0 }
 0x1c3   :  { %v3980_v8 = vpop.f32.mrf.mxu0 }
 0x1c5   :  { %v3983_v53 = vpop.f32.mrf.mxu0 }
 0x1c7   :  { %v3990_v27 = vpop.f32.mrf.mxu0 }
 0x1c9   :  { %v3995_v37 = vpop.f32.mrf.mxu0 }
 0x1cb   :  { %v4000_v47 = vpop.f32.mrf.mxu0 }
 0x1cd   :  { %v1999_v51 = vpop.f32.mrf.mxu0 }
 0x1ce   :  { %v1926_v29 = vpop.f32.mrf.mxu1 }
 0x1cf   :  { %v1927_v40 = vadd.f32 %v1926_v29, %v1854_v32  ;;  %v2001_v59 = vpop.f32.mrf.mxu0  ;;  %v1868_v29 = vadd.f32 %v1867_v49, %v1795_v11 }
 0x1d0   :  { %v1928_v36 = vpop.f32.mrf.mxu1 }
 0x1d1   :  { %v1929_v61 = vadd.f32 %v1928_v36, %v1856_v25  ;;  %v2003_v44 = vpop.f32.mrf.mxu0  ;;  %v2000_v1 = vadd.f32 %v1999_v51, %v1927_v40  ;;  %v1803_v25 = vadd.f32 %v3961_v10, %v3993_v16  ;;  %v1874_v10 = vadd.f32 %v3969_v23, %v1801_v26 }
 0x1d2   :  { %v1930_v38 = vpop.f32.mrf.mxu1  ;;  %v1811_v23 = vadd.f32 %v3971_v20, %v3986_v24  ;;  %v1815_v20 = vadd.f32 %v3988_v21, %v3986_v24 }
 0x1d3   :  { %v2002_v58 = vadd.f32 %v2001_v59, %v1929_v61  ;;  %v1931_v3 = vadd.f32 %v1930_v38, %v1858_v31  ;;  %v2005_v42 = vpop.f32.mrf.mxu0  ;;  %v2040_v63 = vmul.f32 0.2, %v2000_v1  ;;  %v1876_v41 = vadd.f32 %v3973_v28, %v1803_v25 }
 0x1d4   :  { %v1932_v56 = vpop.f32.mrf.mxu1  ;;  %v1813_v28 = vadd.f32 %v3978_v5, %v3993_v16  ;;  %v1884_v5 = vadd.f32 %v3983_v53, %v1811_v23  ;;  %v3639_v23 = vmov 1966171168  }
 0x1d5   :  { %v2004_v6 = vadd.f32 %v2003_v44, %v1931_v3  ;;  %v1933_v46 = vadd.f32 %v1932_v56, %v1860_v35  ;;  %v2009_v48 = vpop.f32.mrf.mxu0  ;;  %v2041_v15 = vmul.f32 0.2, %v2002_v58  ;;  %v2072_v59 = vmax.f32 %v2000_v1, %v2040_v63 }
 0x1d6   :  { %v1936_v13 = vpop.f32.mrf.mxu1  ;;  %v1807_v1 = vadd.f32 %v3967_v62, %v3993_v16  ;;  %v1878_v56 = vadd.f32 %v3975_v57, %v1805_v22 }
 0x1d7   :  { %v2044_v7 = vmul.f32 0.2, %v2004_v6  ;;  %v2006_v54 = vadd.f32 %v2005_v42, %v1933_v46  ;;  %v2011_v9 = vpop.f32.mrf.mxu0  ;;  %v1937_v45 = vadd.f32 %v1936_v13, %v1864_v2  ;;  %v2073_v40 = vmax.f32 %v2002_v58, %v2041_v15 }
 0x1d8   :  { %v1938_v43 = vpop.f32.mrf.mxu1  ;;  %v1880_v62 = vadd.f32 %v3980_v8, %v1807_v1  ;;  %v1886_v8 = vadd.f32 %v3990_v27, %v1813_v28  ;;  %v2721_v28 = vunpack.c.l.s4 %v3639_v23 }
 0x1d9   :  { %v2045_v14 = vmul.f32 0.2, %v2006_v54  ;;  %v1939_v32 = vadd.f32 %v1938_v43, %v1866_v4  ;;  %v2076_v51 = vmax.f32 %v2004_v6, %v2044_v7  ;;  %v2013_v33 = vpop.f32.mrf.mxu0  ;;  %v2010_v39 = vadd.f32 %v2009_v48, %v1937_v45 }
 0x1da   :  { %v1940_v34 = vpop.f32.mrf.mxu1 }
 0x1db   :  { %v2077_v36 = vmax.f32 %v2006_v54, %v2045_v14  ;;  %v2012_v0 = vadd.f32 %v2011_v9, %v1939_v32  ;;  %v1941_v18 = vadd.f32 %v1940_v34, %v1868_v29  ;;  %v2015_v61 = vpop.f32.mrf.mxu0  ;;  %v2104_v49 = vpack.c.bf16 %v2076_v51, %v2072_v59 }
 0x1dc   :  { %v1942_v31 = vpop.f32.mrf.mxu1  ;;  %v2048_v2 = vmul.f32 0.2, %v2010_v39 }
 0x1dd   :  { %v1943_v38 = vadd.f32 %v1942_v31, %v1870_v19  ;;  %v2105_v44 = vpack.c.bf16 %v2077_v36, %v2073_v40  ;;  %v2014_v12 = vadd.f32 %v2013_v33, %v1941_v18  ;;  %v2019_v3 = vpop.f32.mrf.mxu0  ;;  %v2049_v42 = vmul.f32 0.2, %v2012_v0 }
 0x1de   :  { %v1946_v35 = vpop.f32.mrf.mxu1  ;;  %v2080_v14 = vmax.f32 %v2010_v39, %v2048_v2  ;;  %v1817_v40 = vadd.f32 %v3998_v50, %v3993_v16  ;;  %v1888_v36 = vadd.f32 %v3995_v37, %v1815_v20 }
 0x1df   :  { %v2016_v58 = vadd.f32 %v2015_v61, %v1943_v38  ;;  %2619 = vmatprep.mubr.bf16.mxu1 %v2105_v44  ;;  %v2052_v6 = vmul.f32 0.2, %v2014_v12  ;;  %v2021_v52 = vpop.f32.mrf.mxu0  ;;  %v1947_v48 = vadd.f32 %v1946_v35, %v1874_v10  ;;  %v2081_v63 = vmax.f32 %v2012_v0, %v2049_v42 }
 0x1e0   :  { %v1948_v46 = vpop.f32.mrf.mxu1  ;;  %2620 = vmatmul.mubr.bf16.vlgmr.msra.gmra.mxu1 %v2104_v49  ;;  %v1890_v61 = vadd.f32 %v4000_v47, %v1817_v40 }
 0x1e1   :  { %v2053_v13 = vmul.f32 0.2, %v2016_v58  ;;  %v1949_v4 = vadd.f32 %v1948_v46, %v1876_v41  ;;  %v2023_v7 = vpop.f32.mrf.mxu0  ;;  %v2084_v57 = vmax.f32 %v2014_v12, %v2052_v6  ;;  %v2020_v45 = vadd.f32 %v2019_v3, %v1947_v48 }
 0x1e2   :  { %v1950_v15 = vpop.f32.mrf.mxu1 }
 0x1e3   :  { %v2085_v54 = vmax.f32 %v2016_v58, %v2053_v13  ;;  %v1951_v11 = vadd.f32 %v1950_v15, %v1878_v56  ;;  %v2022_v43 = vadd.f32 %v2021_v52, %v1949_v4  ;;  %v2025_v30 = vpop.f32.mrf.mxu0  ;;  %v2108_v19 = vpack.c.bf16 %v2084_v57, %v2080_v14  ;;  %v4038_v15 = vld.sshfl [vmem:[%s4109_s5] sm:$0x11 pattern:$0x75316420] }
 0x1e4   :  { %v1952_v9 = vpop.f32.mrf.mxu1  ;;  %v2056_v24 = vmul.f32 0.2, %v2020_v45 }
 0x1e5   :  { %v2024_v32 = vadd.f32 %v2023_v7, %v1951_v11  ;;  %v1953_v26 = vadd.f32 %v1952_v9, %v1880_v62  ;;  %v2029_v51 = vpop.f32.mrf.mxu0  ;;  %v2109_v34 = vpack.c.bf16 %v2085_v54, %v2081_v63  ;;  %v2057_v59 = vmul.f32 0.2, %v2022_v43  ;;  %v2701_v63 = vld [vmem:[#allocation2] sm:$0x1] }
 0x1e6   :  { %v1956_v29 = vpop.f32.mrf.mxu1  ;;  %v2088_v12 = vmax.f32 %v2020_v45, %v2056_v24  ;;  %v2722_v7 = vunpack.c.0.s8 %v2721_v28  ;;  %v2719_v62 = vcombine.high %v4038_v15, %v4038_v15  ;;  %2704 = vperm.xlu0 %3108, %v2701_v63  }
 0x1e7   :  { %v2060_v33 = vmul.f32 0.2, %v2024_v32  ;;  %v2026_v25 = vadd.f32 %v2025_v30, %v1953_v26  ;;  %2629 = vmatprep.mubr.bf16.mxu1 %v2109_v34  ;;  %v2031_v18 = vpop.f32.mrf.mxu0  ;;  %v1957_v53 = vadd.f32 %v1956_v29, %v1884_v5  ;;  %v2089_v16 = vmax.f32 %v2022_v43, %v2057_v59 }
 0x1e8   :  { %v1958_v0 = vpop.f32.mrf.mxu1  ;;  %2630 = vmatmul.mubr.bf16.gmra.mxu1 %v2108_v19  ;;  %v4043_v57 = vsub.s32 %v2722_v7, %v3878_v17 }
 0x1e9   :  { %v2061_v21 = vmul.f32 0.2, %v2026_v25  ;;  %v1959_v31 = vadd.f32 %v1958_v0, %v1886_v8  ;;  %v2033_v39 = vpop.f32.mrf.mxu0  ;;  %v2092_v38 = vmax.f32 %v2024_v32, %v2060_v33  ;;  %v2030_v35 = vadd.f32 %v2029_v51, %v1957_v53 }
 0x1ea   :  { %v1960_v27 = vpop.f32.mrf.mxu1  ;;  %v2726_v54 = vrot.slane %v4038_v15, %v4043_v57  ;;  %v2733_v11 = vrot.slane %v2719_v62, %v4043_v57 }
 0x1eb   :  { %v2093_v44 = vmax.f32 %v2026_v25, %v2061_v21  ;;  %v2032_v22 = vadd.f32 %v2031_v18, %v1959_v31  ;;  %v1961_v49 = vadd.f32 %v1960_v27, %v1888_v36  ;;  %v2035_v37 = vpop.f32.mrf.mxu0  ;;  %v2112_v42 = vpack.c.bf16 %v2092_v38, %v2088_v12 }
 0x1ec   :  { %v1962_v50 = vpop.f32.mrf.mxu1  ;;  %v2064_v47 = vmul.f32 0.2, %v2030_v35  ;;  %2768 = vmatprep.mubr.bf16.mxu0 %v2733_v11 }
 0x1ed   :  { %v2034_v3 = vadd.f32 %v2033_v39, %v1961_v49  ;;  %v1963_v10 = vadd.f32 %v1962_v50, %v1890_v61  ;;  %v2113_v41 = vpack.c.bf16 %v2093_v44, %v2089_v16  ;;  %v2065_v58 = vmul.f32 0.2, %v2032_v22  ;;  %v2182_v61 = vld [vmem:[%s4108_s4] sm:$0x3]  ;;  %s3640_s4 = smov [#allocation9]  }
 0x1ee   :  { %v2096_v13 = vmax.f32 %v2030_v35, %v2064_v47  ;;  %v2191_v38 = vrot.slane %v2182_v61, %v307_v60  ;;  %v4076_v44 = vrot.slane %v2182_v61, %v3883_v55  ;;  %s2789_s24 = sshll.u32 %s3640_s4, 4  ;;  %s2790_s24 = int_to_ptr.vmem [resolvable:$true] %s2789_s24 }
 0x1ef   :  { %v2068_v1 = vmul.f32 0.2, %v2034_v3  ;;  %v2036_v56 = vadd.f32 %v2035_v37, %v1963_v10  ;;  %2639 = vmatprep.mubr.bf16.mxu1 %v2113_v41  ;;  %v2097_v46 = vmax.f32 %v2032_v22, %v2065_v58  ;;  %s3603_s25 = scalar_lea.vmem %s2790_s24, 16  ;;  %s3607_s26 = scalar_lea.vmem %s2790_s24, 32 }
 0x1f0   :  { %2640 = vmatmul.mubr.bf16.gmra.mxu1 %v2112_v42  ;;  %p3604_p1 = scmp.ne.s32.totalorder %s2790_s24, %s3603_s25  ;;  %p3608_p2 = scmp.lt.s32.totalorder %s2790_s24, %s2790_s24 }
 0x1f1   :  { %v2069_v6 = vmul.f32 0.2, %v2036_v56  ;;  %v2100_v52 = vmax.f32 %v2034_v3, %v2068_v1  ;;  %p3609_p3 = scmp.lt.s32.totalorder %s3607_s26, %s3603_s25 }
 0x1f3   :  { %v2101_v2 = vmax.f32 %v2036_v56, %v2069_v6  ;;  %v2116_v4 = vpack.c.bf16 %v2100_v52, %v2096_v13  ;;  %p3610_p4 = por %p3609_p3, %p3608_p2 }
 0x1f5   :  { %v2117_v48 = vpack.c.bf16 %v2101_v2, %v2097_v46  ;;  %p3611_p5 = pnand %p3610_p4, %p3604_p1 }
 0x1f7   :  { %2649 = vmatprep.mubr.bf16.mxu1 %v2117_v48 }
 0x1f8   :  { %2650 = vmatmul.mubr.bf16.gmra.mxu1 %v2116_v4 }
 0x23f   :  { %v4048_v43 = vpop.f32.mrf.mxu0 }
 0x241   :  { %v4050_v9 = vpop.f32.mrf.mxu0 }
 0x243   :  { %v4052_v30 = vpop.f32.mrf.mxu0 }
 0x245   :  { %v4054_v14 = vpop.f32.mrf.mxu0 }
 0x247   :  { %v4056_v45 = vpop.f32.mrf.mxu0 }
 0x249   :  { %v2560_v32 = vpop.f32.mrf.mxu0 }
 0x24a   :  { %v2561_v28 = vadd.f32 %v2560_v32, %v2191_v38 }
 0x24b   :  { %v4058_v26 = vpop.f32.mrf.mxu0 }
 0x24c   :  { %v2563_v32 = vadd.f32 %v4058_v26, %v4076_v44 }
 0x24d   :  { %v2564_v20 = vpop.f32.mrf.mxu0 }
 0x24e   :  { %v2565_v48 = vadd.f32 %v2564_v20, %v2191_v38 }
 0x24f   :  { %v2568_v5 = vpop.f32.mrf.mxu0 }
 0x250   :  { %v2569_v7 = vadd.f32 %v2568_v5, %v4076_v44 }
 0x251   :  { %v2570_v34 = vpop.f32.mrf.mxu0 }
 0x252   :  { %v2571_v35 = vadd.f32 %v2570_v34, %v2191_v38 }
 0x253   :  { %v2572_v25 = vpop.f32.mrf.mxu0 }
 0x254   :  { %v2573_v2 = vadd.f32 %v2572_v25, %v4076_v44 }
 0x255   :  { %v2574_v40 = vpop.f32.mrf.mxu0 }
 0x256   :  { %v2575_v49 = vadd.f32 %v2574_v40, %v2191_v38 }
 0x257   :  { %v2578_v0 = vpop.f32.mrf.mxu0 }
 0x258   :  { %v2579_v50 = vadd.f32 %v2578_v0, %v4076_v44 }
 0x259   :  { %v2580_v21 = vpop.f32.mrf.mxu0 }
 0x25a   :  { %v2581_v16 = vadd.f32 %v2580_v21, %v2191_v38 }
 0x25b   :  { %v2582_v27 = vpop.f32.mrf.mxu0 }
 0x25c   :  { %v2583_v3 = vadd.f32 %v2582_v27, %v4076_v44 }
 0x25d   :  { %v2584_v37 = vpop.f32.mrf.mxu0 }
 0x25e   :  { %v2585_v56 = vadd.f32 %v2584_v37, %v2191_v38 }
 0x2a0   :  { %v4060_v29 = vpop.f32.mrf.mxu1 }
 0x2a2   :  { %v4062_v51 = vpop.f32.mrf.mxu1 }
 0x2a4   :  { %v4064_v8 = vpop.f32.mrf.mxu1 }
 0x2a6   :  { %v4066_v33 = vpop.f32.mrf.mxu1 }
 0x2a8   :  { %v4068_v19 = vpop.f32.mrf.mxu1 }
 0x2aa   :  { %v2633_v36 = vpop.f32.mrf.mxu1 }
 0x2ab   :  { %v2634_v61 = vadd.f32 %v2633_v36, %v2561_v28 }
 0x2ac   :  { %v2635_v59 = vpop.f32.mrf.mxu1 }
 0x2ad   :  { %v2636_v36 = vadd.f32 %v2635_v59, %v2563_v32 }
 0x2ae   :  { %v2637_v18 = vpop.f32.mrf.mxu1 }
 0x2af   :  { %v2638_v63 = vadd.f32 %v2637_v18, %v2565_v48  ;;  %v2555_v18 = vadd.f32 %v4054_v14, %v2191_v38 }
 0x2b0   :  { %v2641_v24 = vpop.f32.mrf.mxu1 }
 0x2b1   :  { %v2642_v21 = vadd.f32 %v2641_v24, %v2569_v7  ;;  %v2559_v24 = vadd.f32 %v4056_v45, %v4076_v44  ;;  %v2628_v37 = vadd.f32 %v4066_v33, %v2555_v18  ;;  %v2553_v45 = vadd.f32 %v4052_v30, %v4076_v44 }
 0x2b2   :  { %v2643_v53 = vpop.f32.mrf.mxu1 }
 0x2b3   :  { %v2644_v17 = vadd.f32 %v2643_v53, %v2571_v35  ;;  %v2668_v5 = vmul.f32 0.2, %v2642_v21  ;;  %v2632_v35 = vadd.f32 %v4068_v19, %v2559_v24  ;;  %v2626_v33 = vadd.f32 %v4064_v8, %v2553_v45 }
 0x2b4   :  { %v2645_v31 = vpop.f32.mrf.mxu1 }
 0x2b5   :  { %v2669_v4 = vmul.f32 0.2, %v2644_v17  ;;  %v2646_v62 = vadd.f32 %v2645_v31, %v2573_v2  ;;  %v2665_v31 = vmul.f32 0.2, %v2634_v61  ;;  %v2664_v59 = vmul.f32 0.2, %v2632_v35 }
 0x2b6   :  { %v2647_v39 = vpop.f32.mrf.mxu1 }
 0x2b7   :  { %v2648_v10 = vadd.f32 %v2647_v39, %v2575_v49  ;;  %v2685_v27 = vmax.f32 %v2644_v17, %v2669_v4  ;;  %v2667_v49 = vmul.f32 0.2, %v2638_v63  ;;  %v2680_v17 = vmax.f32 %v2632_v35, %v2664_v59 }
 0x2b8   :  { %v2651_v22 = vpop.f32.mrf.mxu1 }
 0x2b9   :  { %v2652_v58 = vadd.f32 %v2651_v22, %v2579_v50  ;;  %v2671_v47 = vmul.f32 0.2, %v2648_v10  ;;  %v2670_v22 = vmul.f32 0.2, %v2646_v62  ;;  %v2551_v50 = vadd.f32 %v4050_v9, %v2191_v38 }
 0x2ba   :  { %v2653_v12 = vpop.f32.mrf.mxu1  ;;  %v2549_v9 = vadd.f32 %v4048_v43, %v4076_v44  ;;  %v2705_v43 = vpop.permute.xlu0 %2704 }
 0x2bb   :  { %v2654_v41 = vadd.f32 %v2653_v12, %v2581_v16  ;;  %v2672_v13 = vmul.f32 0.2, %v2652_v58  ;;  %v2687_v34 = vmax.f32 %v2648_v10, %v2671_v47  ;;  %v2686_v16 = vmax.f32 %v2646_v62, %v2670_v22 }
 0x2bc   :  { %v2655_v1 = vpop.f32.mrf.mxu1  ;;  %v2683_v12 = vmax.f32 %v2638_v63, %v2667_v49  ;;  %v2624_v26 = vadd.f32 %v4062_v51, %v2551_v50  ;;  %v2681_v10 = vmax.f32 %v2634_v61, %v2665_v31  ;;  %v2622_v51 = vadd.f32 %v4060_v29, %v2549_v9 }
 0x2bd   :  { %v2656_v60 = vadd.f32 %v2655_v1, %v2583_v3  ;;  %v2673_v6 = vmul.f32 0.2, %v2654_v41  ;;  %v2688_v53 = vmax.f32 %v2652_v58, %v2672_v13  ;;  %v2697_v20 = vpack.c.bf16 %v2687_v34, %v2685_v27 }
 0x2be   :  { %v2657_v42 = vpop.f32.mrf.mxu1  ;;  %v2684_v3 = vmax.f32 %v2642_v21, %v2668_v5  ;;  %v2663_v58 = vmul.f32 0.2, %v2628_v37  ;;  %v2695_v1 = vpack.c.bf16 %v2683_v12, %v2681_v10  ;;  %v2710_v8 = vrot.slane %v2705_v43, %v3883_v55 }
 0x2bf   :  { %v2674_v46 = vmul.f32 0.2, %v2656_v60  ;;  %v2658_v52 = vadd.f32 %v2657_v42, %v2585_v56  ;;  %v2689_v40 = vmax.f32 %v2654_v41, %v2673_v6  ;;  %v2666_v41 = vmul.f32 0.2, %v2636_v36 }
 0x2c0   :  { %v2696_v14 = vpack.c.bf16 %v2686_v16, %v2684_v3  ;;  %v2661_v56 = vmul.f32 0.2, %v2624_v26  ;;  %v2679_v38 = vmax.f32 %v2628_v37, %v2663_v58  ;;  %v2662_v42 = vmul.f32 0.2, %v2626_v33 }
 0x2c1   :  { %v2675_v23 = vmul.f32 0.2, %v2658_v52  ;;  %v2690_v11 = vmax.f32 %v2656_v60, %v2674_v46  ;;  %v2682_v19 = vmax.f32 %v2636_v36, %v2666_v41  ;;  %v2660_v46 = vmul.f32 0.2, %v2622_v51 }
 0x2c2   :  { %v2677_v60 = vmax.f32 %v2624_v26, %v2661_v56  ;;  %v2678_v30 = vmax.f32 %v2626_v33, %v2662_v42 }
 0x2c3   :  { %v2691_v0 = vmax.f32 %v2658_v52, %v2675_v23  ;;  %v2698_v25 = vpack.c.bf16 %v2690_v11, %v2688_v53  ;;  %v2694_v47 = vpack.c.bf16 %v2682_v19, %v2680_v17  ;;  %v2676_v52 = vmax.f32 %v2622_v51, %v2660_v46 }
 0x2c4   :  { %v2693_v6 = vpack.c.bf16 %v2679_v38, %v2677_v60 }
 0x2c5   :  { %v2699_v39 = vpack.c.bf16 %v2691_v0, %v2689_v40  ;;  %v2692_v2 = vpack.c.bf16 %v2678_v30, %v2676_v52 }
 0x2c7   :  { %2744 = vmatprep.subr.bf16.mxu0 %v2699_v39 }
 0x2c8   :  { %2745 = vmatpush1.bf16.xpose.msra.mxu0 %v2698_v25 }
 0x2c9   :  { %2746 = vmatprep.subr.bf16.mxu0 %v2697_v20 }
 0x2d0   :  { %2747 = vmatpush1.bf16.xpose.msra.mxu0 %v2696_v14 }
 0x2d1   :  { %2748 = vmatprep.subr.bf16.mxu0 %v2695_v1 }
 0x2d8   :  { %2749 = vmatpush1.bf16.xpose.msra.mxu0 %v2694_v47 }
 0x2d9   :  { %2750 = vmatprep.subr.bf16.mxu0 %v2693_v6 }
 0x2e0   :  { %2751 = vmatpush1.bf16.xpose.msra.mxu0 %v2692_v2 }
 0x2e7   :  { %2769 = vmatmul.mubr.bf16.vlgmr.msra.gmra.mxu0 %v2726_v54 }
 0x3a7   :  { %v2770_v29 = vpop.f32.mrf.mxu0 }
 0x3a8   :  { %v2771_v44 = vadd.f32 %v2770_v29, %v2710_v8 }
 0x3a9   :  { %v2772_v13 = vpop.f32.mrf.mxu0 }
 0x3aa   :  { %v2776_v48 = vsub.f32 0.0, %v2771_v44 }
 0x3ab   :  { %v2773_v4 = vpop.f32.mrf.mxu0 }
 0x3ac   :  { %v2777_v23 = vmul.f32 1.442695, %v2776_v48 }
 0x3ad   :  { %v2774_v28 = vpop.f32.mrf.mxu0 }
 0x3ae   :  { %3539 = vpow2.f32 %v2777_v23 }
 0x3bb   :  { %v3540_v7 = vpop.eup %3539 }
 0x3bc   :  { %v2779_v62 = vadd.f32 1.0, %v3540_v7 }
 0x3be   :  { %3541 = vrcp.f32 %v2779_v62 }
 0x3cb   :  { %v3542_v15 = vpop.eup %3541 }
 0x3cc   :  { %2782 = vst.msk [vmem:[#allocation9] sm:$0x1] %vm2781_vm1, %v3542_v15 }
 0x3cd   :  { %3614 = shalt.err (!%p3611_p5)
}
 0x3ce   :  { %2792 = dma.vmem_to_hbm [thread:$0]  %s2790_s24, 16, %s4111_s7, [#allocation5]  }
 0x3cf   :  { %3627 = dma.done.wait [#allocation5], 16  }
 0x3d0   :  { %3628 = vsyncadd [#allocation5], 4294967280 }
 0x3d1   :  { %2796 = vsyncpa [#allocation4], 1 }
 0x3d2   :  { %2797 = vsyncpa [#allocation7], 1 }
 0x3d3   :  { %2798 = vsyncpa [#allocation5], 1 }

</bundles_post_ra>
